<compile_context>
chip_gen: v7x
topology: tpu7x:2x2x1
jax: 0.10.0
libtpu: 0.0.40
codegen_flags: <defaults>
</compile_context>

<pallas_src>
import functools
from math import exp

import numpy as np
import jax
import jax.numpy as jnp
from jax.experimental import pallas as pl
from jax.experimental.pallas import tpu as pltpu


_MS_SSIM_WEIGHTS = (0.0448, 0.2856, 0.3001, 0.2363, 0.1333)


def _round_up(x, m):
    return ((x + m - 1) // m) * m


# ----------------------------------------------------------------------------
# Host-side (trace-time) construction of conv / pool matrices.
# ----------------------------------------------------------------------------
def _gaussian_1d(window_size: int, sigma: float) -> np.ndarray:
    g = np.array(
        [exp(-((x - window_size // 2) ** 2) / float(2 * sigma ** 2))
         for x in range(window_size)],
        dtype=np.float64,
    )
    return g / g.sum()


def _band_matrix(out_dim: int, in_dim: int, g: np.ndarray, pad: int) -> np.ndarray:
    """Row i of the result holds the (zero-padded) conv taps for output i."""
    m = np.zeros((out_dim, in_dim), dtype=np.float64)
    ws = g.shape[0]
    for i in range(out_dim):
        for u in range(ws):
            k = i + u - pad
            if 0 <= k < in_dim:
                m[i, k] += g[u]
    return m


def _conv_kron(h: int, w: int, window_size: int, sigma: float):
    """K (h*w, hout*wout) with X.reshape(-1) @ K == conv2d(X, g⊗g, pad=ws//2)."""
    pad = window_size // 2
    g = _gaussian_1d(window_size, sigma)
    hout = h + 2 * pad - window_size + 1
    wout = w + 2 * pad - window_size + 1
    ah = _band_matrix(hout, h, g, pad)   # (hout, h)
    aw = _band_matrix(wout, w, g, pad)   # (wout, w)
    k = np.kron(ah.T, aw.T)              # (h*w, hout*wout)
    return k, hout, wout


def _pool_matrix(h: int, w: int):
    """P (h*w, (h//2)*(w//2)) with X.reshape(-1) @ P == avg_pool2d(X, 2, 2)."""
    h2, w2 = h // 2, w // 2
    ph = np.zeros((h2, h), dtype=np.float64)
    pw = np.zeros((w2, w), dtype=np.float64)
    for i in range(h2):
        ph[i, 2 * i] = 0.5
        ph[i, 2 * i + 1] = 0.5
    for j in range(w2):
        pw[j, 2 * j] = 0.5
        pw[j, 2 * j + 1] = 0.5
    return np.kron(ph.T, pw.T), h2, w2


# ----------------------------------------------------------------------------
# Fused Pallas kernel: all pyramid levels + weighted-product epilogue.
# ----------------------------------------------------------------------------
def _recip(x):
    # EUP approximate reciprocal + one Newton-Raphson step (≈ f32 accuracy).
    r = pl.reciprocal(x, approx=True)
    return r * (2.0 - x * r)


def _msssim_kernel(*refs, num_k, n_valid, n_pad, levels, hw, conv_cols,
                   has_conv, pool_off, slab_off, c1, c2, weights):
    x1_ref, x2_ref, pc_ref = refs[0], refs[1], refs[2]
    k_refs = refs[3:3 + num_k]
    out_ref = refs[3 + num_k]          # (1,) f32 in SMEM
    ops_ref = refs[3 + num_k + 1]      # (5*n_pad, slab_width) f32 VMEM scratch

    # Rescale once; the 2x2 avg-pool commutes with the affine rescale.
    a0 = (x1_ref[...] + 1.0) * 0.5
    b0 = (x2_ref[...] + 1.0) * 0.5

    hw0 = hw[0]
    # Level-0 a / b live in the slab; they also feed the all-levels pool matmul.
    ops_ref[0 * n_pad:1 * n_pad, 0:hw0] = a0
    ops_ref[1 * n_pad:2 * n_pad, 0:hw0] = b0

    # One matmul produces the pooled images of ALL later pyramid levels
    # (chained pool matrices, exact power-of-two entries) so the per-level
    # conv matmuls below are mutually independent.
    pooled = None
    if levels > 1:
        pooled = jnp.dot(ops_ref[0:2 * n_pad, 0:hw0], pc_ref[...],
                         preferred_element_type=jnp.float32)

    ssim_means = []
    mcs_means = []
    ki = 0
    for lvl in range(levels):
        w = hw[lvl]
        if lvl == 0:
            a_l, b_l = a0, b0
        else:
            off = pool_off[lvl]
            a_l = pooled[0:n_pad, off:off + w]
            b_l = pooled[n_pad:2 * n_pad, off:off + w]

        if has_conv[lvl]:
            so = slab_off[lvl]
            if lvl > 0:
                ops_ref[0 * n_pad:1 * n_pad, so:so + w] = a_l
                ops_ref[1 * n_pad:2 * n_pad, so:so + w] = b_l
            ops_ref[2 * n_pad:3 * n_pad, so:so + w] = a_l * a_l
            ops_ref[3 * n_pad:4 * n_pad, so:so + w] = b_l * b_l
            ops_ref[4 * n_pad:5 * n_pad, so:so + w] = a_l * b_l
            # One bf16 MXU matmul convolves all five SSIM operands at once.
            lhs = ops_ref[:, so:so + w].astype(jnp.bfloat16)
            res = jnp.dot(lhs, k_refs[ki][...],
                          preferred_element_type=jnp.float32)
            ki += 1
            mu1 = res[0 * n_pad:1 * n_pad]
            mu2 = res[1 * n_pad:2 * n_pad]
            e11 = res[2 * n_pad:3 * n_pad]
            e22 = res[3 * n_pad:4 * n_pad]
            e12 = res[4 * n_pad:5 * n_pad]
            valid_cols = conv_cols[lvl]
            total_cols = res.shape[1]
        else:
            # window_size == 1 -> the Gaussian window is [[1.]] -> identity conv.
            mu1, mu2 = a_l, b_l
            e11, e22, e12 = a_l * a_l, b_l * b_l, a_l * b_l
            valid_cols = w
            total_cols = w

        mu1_sq = mu1 * mu1
        mu2_sq = mu2 * mu2
        mu1_mu2 = mu1 * mu2
        sigma1_sq = e11 - mu1_sq
        sigma2_sq = e22 - mu2_sq
        sigma12 = e12 - mu1_mu2

        v1 = 2.0 * sigma12 + c2
        v2 = sigma1_sq + sigma2_sq + c2
        mcs_map = v1 * _recip(v2)
        ssim_map = (2.0 * mu1_mu2 + c1) * _recip(mu1_sq + mu2_sq + c1) * mcs_map

        # Masked means: padded batch rows and zero-padded conv columns are
        # excluded (padded K columns produce ssim == mcs == 1 exactly).
        masks = []
        if n_valid < n_pad:
            rid = jax.lax.broadcasted_iota(jnp.int32, (n_pad, total_cols), 0)
            masks.append(rid < n_valid)
        if valid_cols < total_cols:
            cid = jax.lax.broadcasted_iota(jnp.int32, (n_pad, total_cols), 1)
            masks.append(cid < valid_cols)
        if masks:
            m = masks[0]
            for extra in masks[1:]:
                m = m & extra
            mf = m.astype(jnp.float32)
            ssim_sum = jnp.sum(ssim_map * mf)
            mcs_sum = jnp.sum(mcs_map * mf)
        else:
            ssim_sum = jnp.sum(ssim_map)
            mcs_sum = jnp.sum(mcs_map)

        scale = jnp.float32(1.0 / (n_valid * valid_cols))
        ssim_means.append(ssim_sum * scale)
        mcs_means.append(mcs_sum * scale)

    # In-kernel weighted-product epilogue:
    #   value = prod_{l<L-1} mcs_l^w_l * ssim_{L-1}^w_{L-1}
    # computed as exp(sum(w * log(stat))) on a lane vector (EUP), so no
    # separate XLA dispatch.  log of a negative stat -> NaN, matching
    # torch.pow semantics for fractional exponents.
    stat_list = list(mcs_means[:levels - 1]) + [ssim_means[levels - 1]]
    lane = jax.lax.broadcasted_iota(jnp.int32, (1, 128), 1)
    stats = jnp.ones((1, 128), jnp.float32)
    wts = jnp.zeros((1, 128), jnp.float32)
    for i in range(levels):
        stats = jnp.where(lane == i, stat_list[i], stats)
        wts = jnp.where(lane == i, jnp.float32(weights[i]), wts)
    tot = jnp.sum(wts * jnp.log(stats))
    value = jnp.max(jnp.exp(jnp.broadcast_to(tot, (1, 128))))
    out_ref[0] = value


# ----------------------------------------------------------------------------
# Wrapper: one pallas_call for the whole pyramid + epilogue.
# ----------------------------------------------------------------------------
@functools.partial(jax.jit, static_argnames=("levels", "max_val"))
def ms_ssim(img1, img2, levels=5, max_val=255.0):
    B, C, H, W = img1.shape
    n = B * C
    n_pad = _round_up(max(n, 1), 8)

    x1 = img1.astype(jnp.float32).reshape(n, H * W)
    x2 = img2.astype(jnp.float32).reshape(n, H * W)
    if n_pad != n:
        zp = ((0, n_pad - n), (0, 0))
        x1 = jnp.pad(x1, zp)
        x2 = jnp.pad(x2, zp)

    # ---- per-level geometry and Kronecker conv matrices (host, trace time) --
    hs, ws_ = [H], [W]
    for _ in range(1, levels):
        hs.append(hs[-1] // 2)
        ws_.append(ws_[-1] // 2)
    hw = tuple(h * w for h, w in zip(hs, ws_))

    has_conv, conv_cols, slab_off, k_mats = [], [], [], []
    slab_total = 0
    for l in range(levels):
        h, w = hs[l], ws_[l]
        wsz = min(h, w, 11)
        if wsz > 1:
            sigma = 1.5 * wsz / 11.0
            km, hout, wout = _conv_kron(h, w, wsz, sigma)
            cols = hout * wout
            cols_pad = _round_up(cols, 128)
            if cols_pad != cols:
                km = np.pad(km, ((0, 0), (0, cols_pad - cols)))
            # bf16 RHS: the matmuls are weight-push dominated; f32 accumulate.
            k_mats.append(jnp.asarray(km.astype(np.float32)).astype(jnp.bfloat16))
            has_conv.append(True)
            conv_cols.append(cols)
            slab_off.append(slab_total)
            slab_total += _round_up(hw[l], 128)
        else:
            has_conv.append(False)
            conv_cols.append(hw[l])
            slab_off.append(0)
    slab_total = max(slab_total, 128)

    # ---- chained 2x2 avg-pool matrices: level-0 -> every later level --------
    pool_off = [0] * levels
    pc_cols = 0
    pc_blocks = []
    chain = None
    for l in range(1, levels):
        pm, _, _ = _pool_matrix(hs[l - 1], ws_[l - 1])
        chain = pm if chain is None else chain @ pm
        pool_off[l] = pc_cols
        pc_blocks.append(chain)
        pc_cols += _round_up(hw[l], 128)
    if levels > 1:
        pc_np = np.zeros((hw[0], pc_cols), dtype=np.float32)
        for l in range(1, levels):
            blk = pc_blocks[l - 1]
            pc_np[:, pool_off[l]:pool_off[l] + blk.shape[1]] = blk
        pc = jnp.asarray(pc_np)
    else:
        pc = jnp.zeros((hw[0], 128), dtype=jnp.float32)

    c1 = (0.01 * max_val) ** 2
    c2 = (0.03 * max_val) ** 2
    weights = _MS_SSIM_WEIGHTS[:levels]

    kern = functools.partial(
        _msssim_kernel,
        num_k=len(k_mats), n_valid=n, n_pad=n_pad, levels=levels,
        hw=hw, conv_cols=tuple(conv_cols), has_conv=tuple(has_conv),
        pool_off=tuple(pool_off), slab_off=tuple(slab_off),
        c1=float(c1), c2=float(c2), weights=tuple(weights))

    # ---- advisory cost estimate ---------------------------------------------
    flops = 2 * (2 * n_pad) * hw[0] * int(pc.shape[1])
    bytes_acc = 2 * n_pad * hw[0] * 4 + int(pc.size) * 4 + 4
    transc = 128
    ki = 0
    for l in range(levels):
        cols = _round_up(conv_cols[l], 128) if has_conv[l] else conv_cols[l]
        if has_conv[l]:
            flops += 2 * (5 * n_pad) * hw[l] * cols
            bytes_acc += int(k_mats[ki].size) * 2
            ki += 1
        flops += 25 * n_pad * cols
        transc += 2 * n_pad * cols
    cost = pl.CostEstimate(flops=int(flops), transcendentals=int(transc),
                           bytes_accessed=int(bytes_acc))

    n_inputs = 3 + len(k_mats)
    res = pl.pallas_call(
        kern,
        out_shape=jax.ShapeDtypeStruct((1,), jnp.float32),
        in_specs=[pl.BlockSpec(memory_space=pltpu.MemorySpace.VMEM)] * n_inputs,
        out_specs=pl.BlockSpec(memory_space=pltpu.MemorySpace.SMEM),
        scratch_shapes=[pltpu.VMEM((5 * n_pad, slab_total), jnp.float32)],
        compiler_params=pltpu.CompilerParams(
            vmem_limit_bytes=32 * 1024 * 1024),
        cost_estimate=cost,
    )(x1, x2, pc, *k_mats)
    return res[0]


class MSSSIMPallas:
    """Mirrors MS_SSIM(size_average=True, max_val=255).forward."""

    def __init__(self, size_average=True, max_val=255):
        self.size_average = size_average
        self.channel = 3
        self.max_val = float(max_val)

    def __call__(self, img1, img2):
        return ms_ssim(img1, img2, levels=5, max_val=self.max_val)


if __name__ == "__main__":
    key = jax.random.PRNGKey(0)
    k1, k2 = jax.random.split(key)
    # NCHW inputs, C=3 (the module hard-codes channel=3 for the grouped conv);
    # spatial 16 survives the 5-level /2 pyramid (16 -> 8 -> 4 -> 2 -> 1).
    img1 = jax.random.uniform(k1, (2, 3, 16, 16), jnp.float32,
                              minval=-1.0, maxval=1.0)
    img2 = jax.random.uniform(k2, (2, 3, 16, 16), jnp.float32,
                              minval=-1.0, maxval=1.0)

    model = MSSSIMPallas(size_average=True, max_val=255)
    out = model(img1, img2)
    jax.block_until_ready(out)
    print("KERNEL_OK")
</pallas_src>

<mosaic_0001>
module attributes {stable_mosaic.version = 11 : i64} {
  func.func @_msssim_kernel(%arg0: memref<8x256xf32, #tpu.memory_space<vmem>>, %arg1: memref<8x256xf32, #tpu.memory_space<vmem>>, %arg2: memref<256x512xf32, #tpu.memory_space<vmem>>, %arg3: memref<256x256xbf16, #tpu.memory_space<vmem>>, %arg4: memref<64x128xbf16, #tpu.memory_space<vmem>>, %arg5: memref<16x128xbf16, #tpu.memory_space<vmem>>, %arg6: memref<4x128xbf16, #tpu.memory_space<vmem>>, %arg7: memref<1xf32, #tpu.memory_space<smem>>, %arg8: memref<40x640xf32, #tpu.memory_space<vmem>>) attributes {dimension_semantics = [], scalar_prefetch = 0 : i64, scratch_operands = 1 : i64, tpu.core_type = #tpu.core_type<tc>} {
    %c0 = arith.constant 0 : index
    %c0_0 = arith.constant 0 : index
    %0 = vector.load %arg0[%c0, %c0_0] : memref<8x256xf32, #tpu.memory_space<vmem>>, vector<8x256xf32>
    %cst = arith.constant 1.000000e+00 : f32
    %1 = vector.broadcast %cst : f32 to vector<8x256xf32>
    %2 = arith.addf %0, %1 : vector<8x256xf32>
    %cst_1 = arith.constant 5.000000e-01 : f32
    %3 = vector.broadcast %cst_1 : f32 to vector<8x256xf32>
    %4 = arith.mulf %2, %3 : vector<8x256xf32>
    %c0_2 = arith.constant 0 : index
    %c0_3 = arith.constant 0 : index
    %5 = vector.load %arg1[%c0_2, %c0_3] : memref<8x256xf32, #tpu.memory_space<vmem>>, vector<8x256xf32>
    %cst_4 = arith.constant 1.000000e+00 : f32
    %6 = vector.broadcast %cst_4 : f32 to vector<8x256xf32>
    %7 = arith.addf %5, %6 : vector<8x256xf32>
    %cst_5 = arith.constant 5.000000e-01 : f32
    %8 = vector.broadcast %cst_5 : f32 to vector<8x256xf32>
    %9 = arith.mulf %7, %8 : vector<8x256xf32>
    %c0_6 = arith.constant 0 : index
    %c0_7 = arith.constant 0 : index
    %10 = vector.load %arg8[%c0_6, %c0_7] : memref<40x640xf32, #tpu.memory_space<vmem>>, vector<8x256xf32>
    tpu.vector_store %arg8[%c0_6, %c0_7], %4 {strides = array<i32>} : memref<40x640xf32, #tpu.memory_space<vmem>>, vector<8x256xf32>,
    %c8 = arith.constant 8 : index
    %c0_8 = arith.constant 0 : index
    %11 = vector.load %arg8[%c8, %c0_8] : memref<40x640xf32, #tpu.memory_space<vmem>>, vector<8x256xf32>
    tpu.vector_store %arg8[%c8, %c0_8], %9 {strides = array<i32>} : memref<40x640xf32, #tpu.memory_space<vmem>>, vector<8x256xf32>,
    %c0_9 = arith.constant 0 : index
    %c0_10 = arith.constant 0 : index
    %12 = vector.load %arg8[%c0_9, %c0_10] : memref<40x640xf32, #tpu.memory_space<vmem>>, vector<16x256xf32>
    %c0_11 = arith.constant 0 : index
    %c0_12 = arith.constant 0 : index
    %13 = vector.load %arg2[%c0_11, %c0_12] : memref<256x512xf32, #tpu.memory_space<vmem>>, vector<256x512xf32>
    %cst_13 = arith.constant dense<0.000000e+00> : vector<16x512xf32>
    %14 = tpu.matmul %12, %13, %cst_13 {dimension_numbers = #tpu.dot_dimension_numbers<[1], [0], [0], [1], [0, 0, 1, 1], [], []>} : vector<16x256xf32>, vector<256x512xf32>, vector<16x512xf32> -> vector<16x512xf32>
    %15 = arith.mulf %4, %4 : vector<8x256xf32>
    %c16 = arith.constant 16 : index
    %c0_14 = arith.constant 0 : index
    %16 = vector.load %arg8[%c16, %c0_14] : memref<40x640xf32, #tpu.memory_space<vmem>>, vector<8x256xf32>
    tpu.vector_store %arg8[%c16, %c0_14], %15 {strides = array<i32>} : memref<40x640xf32, #tpu.memory_space<vmem>>, vector<8x256xf32>,
    %17 = arith.mulf %9, %9 : vector<8x256xf32>
    %c24 = arith.constant 24 : index
    %c0_15 = arith.constant 0 : index
    %18 = vector.load %arg8[%c24, %c0_15] : memref<40x640xf32, #tpu.memory_space<vmem>>, vector<8x256xf32>
    tpu.vector_store %arg8[%c24, %c0_15], %17 {strides = array<i32>} : memref<40x640xf32, #tpu.memory_space<vmem>>, vector<8x256xf32>,
    %19 = arith.mulf %4, %9 : vector<8x256xf32>
    %c32 = arith.constant 32 : index
    %c0_16 = arith.constant 0 : index
    %20 = vector.load %arg8[%c32, %c0_16] : memref<40x640xf32, #tpu.memory_space<vmem>>, vector<8x256xf32>
    tpu.vector_store %arg8[%c32, %c0_16], %19 {strides = array<i32>} : memref<40x640xf32, #tpu.memory_space<vmem>>, vector<8x256xf32>,
    %c0_17 = arith.constant 0 : index
    %c0_18 = arith.constant 0 : index
    %21 = vector.load %arg8[%c0_17, %c0_18] : memref<40x640xf32, #tpu.memory_space<vmem>>, vector<40x256xf32>
    %22 = arith.truncf %21 : vector<40x256xf32> to vector<40x256xbf16>
    %c0_19 = arith.constant 0 : index
    %c0_20 = arith.constant 0 : index
    %23 = vector.load %arg3[%c0_19, %c0_20] : memref<256x256xbf16, #tpu.memory_space<vmem>>, vector<256x256xbf16>
    %cst_21 = arith.constant dense<0.000000e+00> : vector<40x256xf32>
    %24 = tpu.matmul %22, %23, %cst_21 {dimension_numbers = #tpu.dot_dimension_numbers<[1], [0], [0], [1], [0, 0, 1, 1], [], []>} : vector<40x256xbf16>, vector<256x256xbf16>, vector<40x256xf32> -> vector<40x256xf32>
    %25 = vector.extract_strided_slice %24 {offsets = [0, 0], sizes = [8, 256], strides = [1, 1]} : vector<40x256xf32> to vector<8x256xf32>
    %26 = vector.extract_strided_slice %24 {offsets = [8, 0], sizes = [8, 256], strides = [1, 1]} : vector<40x256xf32> to vector<8x256xf32>
    %27 = vector.extract_strided_slice %24 {offsets = [16, 0], sizes = [8, 256], strides = [1, 1]} : vector<40x256xf32> to vector<8x256xf32>
    %28 = vector.extract_strided_slice %24 {offsets = [24, 0], sizes = [8, 256], strides = [1, 1]} : vector<40x256xf32> to vector<8x256xf32>
    %29 = vector.extract_strided_slice %24 {offsets = [32, 0], sizes = [8, 256], strides = [1, 1]} : vector<40x256xf32> to vector<8x256xf32>
    %30 = arith.mulf %25, %25 : vector<8x256xf32>
    %31 = arith.mulf %26, %26 : vector<8x256xf32>
    %32 = arith.mulf %25, %26 : vector<8x256xf32>
    %33 = arith.subf %27, %30 : vector<8x256xf32>
    %34 = arith.subf %28, %31 : vector<8x256xf32>
    %35 = arith.subf %29, %32 : vector<8x256xf32>
    %cst_22 = arith.constant 2.000000e+00 : f32
    %36 = vector.broadcast %cst_22 : f32 to vector<8x256xf32>
    %37 = arith.mulf %36, %35 : vector<8x256xf32>
    %cst_23 = arith.constant 5.852250e+01 : f32
    %38 = vector.broadcast %cst_23 : f32 to vector<8x256xf32>
    %39 = arith.addf %37, %38 : vector<8x256xf32>
    %40 = arith.addf %33, %34 : vector<8x256xf32>
    %cst_24 = arith.constant 5.852250e+01 : f32
    %41 = vector.broadcast %cst_24 : f32 to vector<8x256xf32>
    %42 = arith.addf %40, %41 : vector<8x256xf32>
    %43 = tpu.reciprocal %42 {approx = true} : vector<8x256xf32> -> vector<8x256xf32>
    %44 = arith.mulf %42, %43 : vector<8x256xf32>
    %cst_25 = arith.constant 2.000000e+00 : f32
    %45 = vector.broadcast %cst_25 : f32 to vector<8x256xf32>
    %46 = arith.subf %45, %44 : vector<8x256xf32>
    %47 = arith.mulf %43, %46 : vector<8x256xf32>
    %48 = arith.mulf %39, %47 : vector<8x256xf32>
    %49 = tpu.iota {dimensions = array<i32: 0>} : vector<8x256xi32>
    %c6_i32 = arith.constant 6 : i32
    %50 = vector.broadcast %c6_i32 : i32 to vector<8x256xi32>
    %51 = arith.cmpi slt, %49, %50 : vector<8x256xi32>
    %52 = arith.extui %51 : vector<8x256xi1> to vector<8x256xi32>
    %53 = arith.sitofp %52 : vector<8x256xi32> to vector<8x256xf32>
    %54 = arith.mulf %48, %53 : vector<8x256xf32>
    %55 = vector.shape_cast %54 : vector<8x256xf32> to vector<1x8x256xf32>
    %cst_26 = arith.constant dense<0.000000e+00> : vector<1xf32>
    %56 = vector.multi_reduction <add>, %55, %cst_26 [1, 2] : vector<1x8x256xf32> to vector<1xf32>
    %57 = vector.shape_cast %56 : vector<1xf32> to vector<1x1x1xf32>
    %58 = vector.extract %57[0, 0, 0] : f32 from vector<1x1x1xf32>
    %cst_27 = arith.constant 6.51041686E-4 : f32
    %59 = arith.mulf %58, %cst_27 : f32
    %60 = vector.extract_strided_slice %14 {offsets = [0, 0], sizes = [8, 64], strides = [1, 1]} : vector<16x512xf32> to vector<8x64xf32>
    %61 = vector.extract_strided_slice %14 {offsets = [8, 0], sizes = [8, 64], strides = [1, 1]} : vector<16x512xf32> to vector<8x64xf32>
    %c0_28 = arith.constant 0 : index
    %c256 = arith.constant 256 : index
    %62 = vector.load %arg8[%c0_28, %c256] : memref<40x640xf32, #tpu.memory_space<vmem>>, vector<8x64xf32>
    tpu.vector_store %arg8[%c0_28, %c256], %60 {strides = array<i32>} : memref<40x640xf32, #tpu.memory_space<vmem>>, vector<8x64xf32>,
    %c8_29 = arith.constant 8 : index
    %c256_30 = arith.constant 256 : index
    %63 = vector.load %arg8[%c8_29, %c256_30] : memref<40x640xf32, #tpu.memory_space<vmem>>, vector<8x64xf32>
    tpu.vector_store %arg8[%c8_29, %c256_30], %61 {strides = array<i32>} : memref<40x640xf32, #tpu.memory_space<vmem>>, vector<8x64xf32>,
    %64 = arith.mulf %60, %60 : vector<8x64xf32>
    %c16_31 = arith.constant 16 : index
    %c256_32 = arith.constant 256 : index
    %65 = vector.load %arg8[%c16_31, %c256_32] : memref<40x640xf32, #tpu.memory_space<vmem>>, vector<8x64xf32>
    tpu.vector_store %arg8[%c16_31, %c256_32], %64 {strides = array<i32>} : memref<40x640xf32, #tpu.memory_space<vmem>>, vector<8x64xf32>,
    %66 = arith.mulf %61, %61 : vector<8x64xf32>
    %c24_33 = arith.constant 24 : index
    %c256_34 = arith.constant 256 : index
    %67 = vector.load %arg8[%c24_33, %c256_34] : memref<40x640xf32, #tpu.memory_space<vmem>>, vector<8x64xf32>
    tpu.vector_store %arg8[%c24_33, %c256_34], %66 {strides = array<i32>} : memref<40x640xf32, #tpu.memory_space<vmem>>, vector<8x64xf32>,
    %68 = arith.mulf %60, %61 : vector<8x64xf32>
    %c32_35 = arith.constant 32 : index
    %c256_36 = arith.constant 256 : index
    %69 = vector.load %arg8[%c32_35, %c256_36] : memref<40x640xf32, #tpu.memory_space<vmem>>, vector<8x64xf32>
    tpu.vector_store %arg8[%c32_35, %c256_36], %68 {strides = array<i32>} : memref<40x640xf32, #tpu.memory_space<vmem>>, vector<8x64xf32>,
    %c0_37 = arith.constant 0 : index
    %c256_38 = arith.constant 256 : index
    %70 = vector.load %arg8[%c0_37, %c256_38] : memref<40x640xf32, #tpu.memory_space<vmem>>, vector<40x64xf32>
    %71 = arith.truncf %70 : vector<40x64xf32> to vector<40x64xbf16>
    %c0_39 = arith.constant 0 : index
    %c0_40 = arith.constant 0 : index
    %72 = vector.load %arg4[%c0_39, %c0_40] : memref<64x128xbf16, #tpu.memory_space<vmem>>, vector<64x128xbf16>
    %cst_41 = arith.constant dense<0.000000e+00> : vector<40x128xf32>
    %73 = tpu.matmul %71, %72, %cst_41 {dimension_numbers = #tpu.dot_dimension_numbers<[1], [0], [0], [1], [0, 0, 1, 1], [], []>} : vector<40x64xbf16>, vector<64x128xbf16>, vector<40x128xf32> -> vector<40x128xf32>
    %74 = vector.extract_strided_slice %73 {offsets = [0, 0], sizes = [8, 128], strides = [1, 1]} : vector<40x128xf32> to vector<8x128xf32>
    %75 = vector.extract_strided_slice %73 {offsets = [8, 0], sizes = [8, 128], strides = [1, 1]} : vector<40x128xf32> to vector<8x128xf32>
    %76 = vector.extract_strided_slice %73 {offsets = [16, 0], sizes = [8, 128], strides = [1, 1]} : vector<40x128xf32> to vector<8x128xf32>
    %77 = vector.extract_strided_slice %73 {offsets = [24, 0], sizes = [8, 128], strides = [1, 1]} : vector<40x128xf32> to vector<8x128xf32>
    %78 = vector.extract_strided_slice %73 {offsets = [32, 0], sizes = [8, 128], strides = [1, 1]} : vector<40x128xf32> to vector<8x128xf32>
    %79 = arith.mulf %74, %74 : vector<8x128xf32>
    %80 = arith.mulf %75, %75 : vector<8x128xf32>
    %81 = arith.mulf %74, %75 : vector<8x128xf32>
    %82 = arith.subf %76, %79 : vector<8x128xf32>
    %83 = arith.subf %77, %80 : vector<8x128xf32>
    %84 = arith.subf %78, %81 : vector<8x128xf32>
    %cst_42 = arith.constant 2.000000e+00 : f32
    %85 = vector.broadcast %cst_42 : f32 to vector<8x128xf32>
    %86 = arith.mulf %85, %84 : vector<8x128xf32>
    %cst_43 = arith.constant 5.852250e+01 : f32
    %87 = vector.broadcast %cst_43 : f32 to vector<8x128xf32>
    %88 = arith.addf %86, %87 : vector<8x128xf32>
    %89 = arith.addf %82, %83 : vector<8x128xf32>
    %cst_44 = arith.constant 5.852250e+01 : f32
    %90 = vector.broadcast %cst_44 : f32 to vector<8x128xf32>
    %91 = arith.addf %89, %90 : vector<8x128xf32>
    %92 = tpu.reciprocal %91 {approx = true} : vector<8x128xf32> -> vector<8x128xf32>
    %93 = arith.mulf %91, %92 : vector<8x128xf32>
    %cst_45 = arith.constant 2.000000e+00 : f32
    %94 = vector.broadcast %cst_45 : f32 to vector<8x128xf32>
    %95 = arith.subf %94, %93 : vector<8x128xf32>
    %96 = arith.mulf %92, %95 : vector<8x128xf32>
    %97 = arith.mulf %88, %96 : vector<8x128xf32>
    %98 = tpu.iota {dimensions = array<i32: 0>} : vector<8x128xi32>
    %c6_i32_46 = arith.constant 6 : i32
    %99 = vector.broadcast %c6_i32_46 : i32 to vector<8x128xi32>
    %100 = arith.cmpi slt, %98, %99 : vector<8x128xi32>
    %101 = tpu.iota {dimensions = array<i32: 1>} : vector<8x128xi32>
    %c81_i32 = arith.constant 81 : i32
    %102 = vector.broadcast %c81_i32 : i32 to vector<8x128xi32>
    %103 = arith.cmpi slt, %101, %102 : vector<8x128xi32>
    %104 = arith.andi %100, %103 : vector<8x128xi1>
    %105 = arith.extui %104 : vector<8x128xi1> to vector<8x128xi32>
    %106 = arith.sitofp %105 : vector<8x128xi32> to vector<8x128xf32>
    %107 = arith.mulf %97, %106 : vector<8x128xf32>
    %108 = vector.shape_cast %107 : vector<8x128xf32> to vector<1x8x128xf32>
    %cst_47 = arith.constant dense<0.000000e+00> : vector<1xf32>
    %109 = vector.multi_reduction <add>, %108, %cst_47 [1, 2] : vector<1x8x128xf32> to vector<1xf32>
    %110 = vector.shape_cast %109 : vector<1xf32> to vector<1x1x1xf32>
    %111 = vector.extract %110[0, 0, 0] : f32 from vector<1x1x1xf32>
    %cst_48 = arith.constant 0.00205761311 : f32
    %112 = arith.mulf %111, %cst_48 : f32
    %113 = vector.extract_strided_slice %14 {offsets = [0, 128], sizes = [8, 16], strides = [1, 1]} : vector<16x512xf32> to vector<8x16xf32>
    %114 = vector.extract_strided_slice %14 {offsets = [8, 128], sizes = [8, 16], strides = [1, 1]} : vector<16x512xf32> to vector<8x16xf32>
    %c0_49 = arith.constant 0 : index
    %c384 = arith.constant 384 : index
    %115 = vector.load %arg8[%c0_49, %c384] : memref<40x640xf32, #tpu.memory_space<vmem>>, vector<8x16xf32>
    tpu.vector_store %arg8[%c0_49, %c384], %113 {strides = array<i32>} : memref<40x640xf32, #tpu.memory_space<vmem>>, vector<8x16xf32>,
    %c8_50 = arith.constant 8 : index
    %c384_51 = arith.constant 384 : index
    %116 = vector.load %arg8[%c8_50, %c384_51] : memref<40x640xf32, #tpu.memory_space<vmem>>, vector<8x16xf32>
    tpu.vector_store %arg8[%c8_50, %c384_51], %114 {strides = array<i32>} : memref<40x640xf32, #tpu.memory_space<vmem>>, vector<8x16xf32>,
    %117 = arith.mulf %113, %113 : vector<8x16xf32>
    %c16_52 = arith.constant 16 : index
    %c384_53 = arith.constant 384 : index
    %118 = vector.load %arg8[%c16_52, %c384_53] : memref<40x640xf32, #tpu.memory_space<vmem>>, vector<8x16xf32>
    tpu.vector_store %arg8[%c16_52, %c384_53], %117 {strides = array<i32>} : memref<40x640xf32, #tpu.memory_space<vmem>>, vector<8x16xf32>,
    %119 = arith.mulf %114, %114 : vector<8x16xf32>
    %c24_54 = arith.constant 24 : index
    %c384_55 = arith.constant 384 : index
    %120 = vector.load %arg8[%c24_54, %c384_55] : memref<40x640xf32, #tpu.memory_space<vmem>>, vector<8x16xf32>
    tpu.vector_store %arg8[%c24_54, %c384_55], %119 {strides = array<i32>} : memref<40x640xf32, #tpu.memory_space<vmem>>, vector<8x16xf32>,
    %121 = arith.mulf %113, %114 : vector<8x16xf32>
    %c32_56 = arith.constant 32 : index
    %c384_57 = arith.constant 384 : index
    %122 = vector.load %arg8[%c32_56, %c384_57] : memref<40x640xf32, #tpu.memory_space<vmem>>, vector<8x16xf32>
    tpu.vector_store %arg8[%c32_56, %c384_57], %121 {strides = array<i32>} : memref<40x640xf32, #tpu.memory_space<vmem>>, vector<8x16xf32>,
    %c0_58 = arith.constant 0 : index
    %c384_59 = arith.constant 384 : index
    %123 = vector.load %arg8[%c0_58, %c384_59] : memref<40x640xf32, #tpu.memory_space<vmem>>, vector<40x16xf32>
    %124 = arith.truncf %123 : vector<40x16xf32> to vector<40x16xbf16>
    %c0_60 = arith.constant 0 : index
    %c0_61 = arith.constant 0 : index
    %125 = vector.load %arg5[%c0_60, %c0_61] : memref<16x128xbf16, #tpu.memory_space<vmem>>, vector<16x128xbf16>
    %cst_62 = arith.constant dense<0.000000e+00> : vector<40x128xf32>
    %126 = tpu.matmul %124, %125, %cst_62 {dimension_numbers = #tpu.dot_dimension_numbers<[1], [0], [0], [1], [0, 0, 1, 1], [], []>} : vector<40x16xbf16>, vector<16x128xbf16>, vector<40x128xf32> -> vector<40x128xf32>
    %127 = vector.extract_strided_slice %126 {offsets = [0, 0], sizes = [8, 128], strides = [1, 1]} : vector<40x128xf32> to vector<8x128xf32>
    %128 = vector.extract_strided_slice %126 {offsets = [8, 0], sizes = [8, 128], strides = [1, 1]} : vector<40x128xf32> to vector<8x128xf32>
    %129 = vector.extract_strided_slice %126 {offsets = [16, 0], sizes = [8, 128], strides = [1, 1]} : vector<40x128xf32> to vector<8x128xf32>
    %130 = vector.extract_strided_slice %126 {offsets = [24, 0], sizes = [8, 128], strides = [1, 1]} : vector<40x128xf32> to vector<8x128xf32>
    %131 = vector.extract_strided_slice %126 {offsets = [32, 0], sizes = [8, 128], strides = [1, 1]} : vector<40x128xf32> to vector<8x128xf32>
    %132 = arith.mulf %127, %127 : vector<8x128xf32>
    %133 = arith.mulf %128, %128 : vector<8x128xf32>
    %134 = arith.mulf %127, %128 : vector<8x128xf32>
    %135 = arith.subf %129, %132 : vector<8x128xf32>
    %136 = arith.subf %130, %133 : vector<8x128xf32>
    %137 = arith.subf %131, %134 : vector<8x128xf32>
    %cst_63 = arith.constant 2.000000e+00 : f32
    %138 = vector.broadcast %cst_63 : f32 to vector<8x128xf32>
    %139 = arith.mulf %138, %137 : vector<8x128xf32>
    %cst_64 = arith.constant 5.852250e+01 : f32
    %140 = vector.broadcast %cst_64 : f32 to vector<8x128xf32>
    %141 = arith.addf %139, %140 : vector<8x128xf32>
    %142 = arith.addf %135, %136 : vector<8x128xf32>
    %cst_65 = arith.constant 5.852250e+01 : f32
    %143 = vector.broadcast %cst_65 : f32 to vector<8x128xf32>
    %144 = arith.addf %142, %143 : vector<8x128xf32>
    %145 = tpu.reciprocal %144 {approx = true} : vector<8x128xf32> -> vector<8x128xf32>
    %146 = arith.mulf %144, %145 : vector<8x128xf32>
    %cst_66 = arith.constant 2.000000e+00 : f32
    %147 = vector.broadcast %cst_66 : f32 to vector<8x128xf32>
    %148 = arith.subf %147, %146 : vector<8x128xf32>
    %149 = arith.mulf %145, %148 : vector<8x128xf32>
    %150 = arith.mulf %141, %149 : vector<8x128xf32>
    %151 = tpu.iota {dimensions = array<i32: 0>} : vector<8x128xi32>
    %c6_i32_67 = arith.constant 6 : i32
    %152 = vector.broadcast %c6_i32_67 : i32 to vector<8x128xi32>
    %153 = arith.cmpi slt, %151, %152 : vector<8x128xi32>
    %154 = tpu.iota {dimensions = array<i32: 1>} : vector<8x128xi32>
    %c25_i32 = arith.constant 25 : i32
    %155 = vector.broadcast %c25_i32 : i32 to vector<8x128xi32>
    %156 = arith.cmpi slt, %154, %155 : vector<8x128xi32>
    %157 = arith.andi %153, %156 : vector<8x128xi1>
    %158 = arith.extui %157 : vector<8x128xi1> to vector<8x128xi32>
    %159 = arith.sitofp %158 : vector<8x128xi32> to vector<8x128xf32>
    %160 = arith.mulf %150, %159 : vector<8x128xf32>
    %161 = vector.shape_cast %160 : vector<8x128xf32> to vector<1x8x128xf32>
    %cst_68 = arith.constant dense<0.000000e+00> : vector<1xf32>
    %162 = vector.multi_reduction <add>, %161, %cst_68 [1, 2] : vector<1x8x128xf32> to vector<1xf32>
    %163 = vector.shape_cast %162 : vector<1xf32> to vector<1x1x1xf32>
    %164 = vector.extract %163[0, 0, 0] : f32 from vector<1x1x1xf32>
    %cst_69 = arith.constant 0.00666666683 : f32
    %165 = arith.mulf %164, %cst_69 : f32
    %166 = vector.extract_strided_slice %14 {offsets = [0, 256], sizes = [8, 4], strides = [1, 1]} : vector<16x512xf32> to vector<8x4xf32>
    %167 = vector.extract_strided_slice %14 {offsets = [8, 256], sizes = [8, 4], strides = [1, 1]} : vector<16x512xf32> to vector<8x4xf32>
    %c0_70 = arith.constant 0 : index
    %c512 = arith.constant 512 : index
    %168 = vector.load %arg8[%c0_70, %c512] : memref<40x640xf32, #tpu.memory_space<vmem>>, vector<8x4xf32>
    tpu.vector_store %arg8[%c0_70, %c512], %166 {strides = array<i32>} : memref<40x640xf32, #tpu.memory_space<vmem>>, vector<8x4xf32>,
    %c8_71 = arith.constant 8 : index
    %c512_72 = arith.constant 512 : index
    %169 = vector.load %arg8[%c8_71, %c512_72] : memref<40x640xf32, #tpu.memory_space<vmem>>, vector<8x4xf32>
    tpu.vector_store %arg8[%c8_71, %c512_72], %167 {strides = array<i32>} : memref<40x640xf32, #tpu.memory_space<vmem>>, vector<8x4xf32>,
    %170 = arith.mulf %166, %166 : vector<8x4xf32>
    %c16_73 = arith.constant 16 : index
    %c512_74 = arith.constant 512 : index
    %171 = vector.load %arg8[%c16_73, %c512_74] : memref<40x640xf32, #tpu.memory_space<vmem>>, vector<8x4xf32>
    tpu.vector_store %arg8[%c16_73, %c512_74], %170 {strides = array<i32>} : memref<40x640xf32, #tpu.memory_space<vmem>>, vector<8x4xf32>,
    %172 = arith.mulf %167, %167 : vector<8x4xf32>
    %c24_75 = arith.constant 24 : index
    %c512_76 = arith.constant 512 : index
    %173 = vector.load %arg8[%c24_75, %c512_76] : memref<40x640xf32, #tpu.memory_space<vmem>>, vector<8x4xf32>
    tpu.vector_store %arg8[%c24_75, %c512_76], %172 {strides = array<i32>} : memref<40x640xf32, #tpu.memory_space<vmem>>, vector<8x4xf32>,
    %174 = arith.mulf %166, %167 : vector<8x4xf32>
    %c32_77 = arith.constant 32 : index
    %c512_78 = arith.constant 512 : index
    %175 = vector.load %arg8[%c32_77, %c512_78] : memref<40x640xf32, #tpu.memory_space<vmem>>, vector<8x4xf32>
    tpu.vector_store %arg8[%c32_77, %c512_78], %174 {strides = array<i32>} : memref<40x640xf32, #tpu.memory_space<vmem>>, vector<8x4xf32>,
    %c0_79 = arith.constant 0 : index
    %c512_80 = arith.constant 512 : index
    %176 = vector.load %arg8[%c0_79, %c512_80] : memref<40x640xf32, #tpu.memory_space<vmem>>, vector<40x4xf32>
    %177 = arith.truncf %176 : vector<40x4xf32> to vector<40x4xbf16>
    %c0_81 = arith.constant 0 : index
    %c0_82 = arith.constant 0 : index
    %178 = vector.load %arg6[%c0_81, %c0_82] : memref<4x128xbf16, #tpu.memory_space<vmem>>, vector<4x128xbf16>
    %cst_83 = arith.constant dense<0.000000e+00> : vector<40x128xf32>
    %179 = tpu.matmul %177, %178, %cst_83 {dimension_numbers = #tpu.dot_dimension_numbers<[1], [0], [0], [1], [0, 0, 1, 1], [], []>} : vector<40x4xbf16>, vector<4x128xbf16>, vector<40x128xf32> -> vector<40x128xf32>
    %180 = vector.extract_strided_slice %179 {offsets = [0, 0], sizes = [8, 128], strides = [1, 1]} : vector<40x128xf32> to vector<8x128xf32>
    %181 = vector.extract_strided_slice %179 {offsets = [8, 0], sizes = [8, 128], strides = [1, 1]} : vector<40x128xf32> to vector<8x128xf32>
    %182 = vector.extract_strided_slice %179 {offsets = [16, 0], sizes = [8, 128], strides = [1, 1]} : vector<40x128xf32> to vector<8x128xf32>
    %183 = vector.extract_strided_slice %179 {offsets = [24, 0], sizes = [8, 128], strides = [1, 1]} : vector<40x128xf32> to vector<8x128xf32>
    %184 = vector.extract_strided_slice %179 {offsets = [32, 0], sizes = [8, 128], strides = [1, 1]} : vector<40x128xf32> to vector<8x128xf32>
    %185 = arith.mulf %180, %180 : vector<8x128xf32>
    %186 = arith.mulf %181, %181 : vector<8x128xf32>
    %187 = arith.mulf %180, %181 : vector<8x128xf32>
    %188 = arith.subf %182, %185 : vector<8x128xf32>
    %189 = arith.subf %183, %186 : vector<8x128xf32>
    %190 = arith.subf %184, %187 : vector<8x128xf32>
    %cst_84 = arith.constant 2.000000e+00 : f32
    %191 = vector.broadcast %cst_84 : f32 to vector<8x128xf32>
    %192 = arith.mulf %191, %190 : vector<8x128xf32>
    %cst_85 = arith.constant 5.852250e+01 : f32
    %193 = vector.broadcast %cst_85 : f32 to vector<8x128xf32>
    %194 = arith.addf %192, %193 : vector<8x128xf32>
    %195 = arith.addf %188, %189 : vector<8x128xf32>
    %cst_86 = arith.constant 5.852250e+01 : f32
    %196 = vector.broadcast %cst_86 : f32 to vector<8x128xf32>
    %197 = arith.addf %195, %196 : vector<8x128xf32>
    %198 = tpu.reciprocal %197 {approx = true} : vector<8x128xf32> -> vector<8x128xf32>
    %199 = arith.mulf %197, %198 : vector<8x128xf32>
    %cst_87 = arith.constant 2.000000e+00 : f32
    %200 = vector.broadcast %cst_87 : f32 to vector<8x128xf32>
    %201 = arith.subf %200, %199 : vector<8x128xf32>
    %202 = arith.mulf %198, %201 : vector<8x128xf32>
    %203 = arith.mulf %194, %202 : vector<8x128xf32>
    %204 = tpu.iota {dimensions = array<i32: 0>} : vector<8x128xi32>
    %c6_i32_88 = arith.constant 6 : i32
    %205 = vector.broadcast %c6_i32_88 : i32 to vector<8x128xi32>
    %206 = arith.cmpi slt, %204, %205 : vector<8x128xi32>
    %207 = tpu.iota {dimensions = array<i32: 1>} : vector<8x128xi32>
    %c9_i32 = arith.constant 9 : i32
    %208 = vector.broadcast %c9_i32 : i32 to vector<8x128xi32>
    %209 = arith.cmpi slt, %207, %208 : vector<8x128xi32>
    %210 = arith.andi %206, %209 : vector<8x128xi1>
    %211 = arith.extui %210 : vector<8x128xi1> to vector<8x128xi32>
    %212 = arith.sitofp %211 : vector<8x128xi32> to vector<8x128xf32>
    %213 = arith.mulf %203, %212 : vector<8x128xf32>
    %214 = vector.shape_cast %213 : vector<8x128xf32> to vector<1x8x128xf32>
    %cst_89 = arith.constant dense<0.000000e+00> : vector<1xf32>
    %215 = vector.multi_reduction <add>, %214, %cst_89 [1, 2] : vector<1x8x128xf32> to vector<1xf32>
    %216 = vector.shape_cast %215 : vector<1xf32> to vector<1x1x1xf32>
    %217 = vector.extract %216[0, 0, 0] : f32 from vector<1x1x1xf32>
    %cst_90 = arith.constant 0.0185185187 : f32
    %218 = arith.mulf %217, %cst_90 : f32
    %219 = vector.extract_strided_slice %14 {offsets = [0, 384], sizes = [8, 1], strides = [1, 1]} : vector<16x512xf32> to vector<8x1xf32>
    %220 = vector.extract_strided_slice %14 {offsets = [8, 384], sizes = [8, 1], strides = [1, 1]} : vector<16x512xf32> to vector<8x1xf32>
    %221 = arith.mulf %219, %219 : vector<8x1xf32>
    %222 = arith.mulf %220, %220 : vector<8x1xf32>
    %223 = arith.mulf %219, %220 : vector<8x1xf32>
    %224 = arith.mulf %219, %219 : vector<8x1xf32>
    %225 = arith.mulf %220, %220 : vector<8x1xf32>
    %226 = arith.mulf %219, %220 : vector<8x1xf32>
    %227 = arith.subf %221, %224 : vector<8x1xf32>
    %228 = arith.subf %222, %225 : vector<8x1xf32>
    %229 = arith.subf %223, %226 : vector<8x1xf32>
    %cst_91 = arith.constant 2.000000e+00 : f32
    %230 = vector.broadcast %cst_91 : f32 to vector<8x1xf32>
    %231 = arith.mulf %230, %229 : vector<8x1xf32>
    %cst_92 = arith.constant 5.852250e+01 : f32
    %232 = vector.broadcast %cst_92 : f32 to vector<8x1xf32>
    %233 = arith.addf %231, %232 : vector<8x1xf32>
    %234 = arith.addf %227, %228 : vector<8x1xf32>
    %cst_93 = arith.constant 5.852250e+01 : f32
    %235 = vector.broadcast %cst_93 : f32 to vector<8x1xf32>
    %236 = arith.addf %234, %235 : vector<8x1xf32>
    %237 = tpu.reciprocal %236 {approx = true} : vector<8x1xf32> -> vector<8x1xf32>
    %238 = arith.mulf %236, %237 : vector<8x1xf32>
    %cst_94 = arith.constant 2.000000e+00 : f32
    %239 = vector.broadcast %cst_94 : f32 to vector<8x1xf32>
    %240 = arith.subf %239, %238 : vector<8x1xf32>
    %241 = arith.mulf %237, %240 : vector<8x1xf32>
    %242 = arith.mulf %233, %241 : vector<8x1xf32>
    %cst_95 = arith.constant 2.000000e+00 : f32
    %243 = vector.broadcast %cst_95 : f32 to vector<8x1xf32>
    %244 = arith.mulf %243, %226 : vector<8x1xf32>
    %cst_96 = arith.constant 6.502500e+00 : f32
    %245 = vector.broadcast %cst_96 : f32 to vector<8x1xf32>
    %246 = arith.addf %244, %245 : vector<8x1xf32>
    %247 = arith.addf %224, %225 : vector<8x1xf32>
    %cst_97 = arith.constant 6.502500e+00 : f32
    %248 = vector.broadcast %cst_97 : f32 to vector<8x1xf32>
    %249 = arith.addf %247, %248 : vector<8x1xf32>
    %250 = tpu.reciprocal %249 {approx = true} : vector<8x1xf32> -> vector<8x1xf32>
    %251 = arith.mulf %249, %250 : vector<8x1xf32>
    %cst_98 = arith.constant 2.000000e+00 : f32
    %252 = vector.broadcast %cst_98 : f32 to vector<8x1xf32>
    %253 = arith.subf %252, %251 : vector<8x1xf32>
    %254 = arith.mulf %250, %253 : vector<8x1xf32>
    %255 = arith.mulf %246, %254 : vector<8x1xf32>
    %256 = arith.mulf %255, %242 : vector<8x1xf32>
    %257 = tpu.iota {dimensions = array<i32: 0>} : vector<8x1xi32>
    %c6_i32_99 = arith.constant 6 : i32
    %258 = vector.broadcast %c6_i32_99 : i32 to vector<8x1xi32>
    %259 = arith.cmpi slt, %257, %258 : vector<8x1xi32>
    %260 = arith.extui %259 : vector<8x1xi1> to vector<8x1xi32>
    %261 = arith.sitofp %260 : vector<8x1xi32> to vector<8x1xf32>
    %262 = arith.mulf %256, %261 : vector<8x1xf32>
    %263 = vector.shape_cast %262 : vector<8x1xf32> to vector<1x8x1xf32>
    %cst_100 = arith.constant dense<0.000000e+00> : vector<1xf32>
    %264 = vector.multi_reduction <add>, %263, %cst_100 [1, 2] : vector<1x8x1xf32> to vector<1xf32>
    %265 = vector.shape_cast %264 : vector<1xf32> to vector<1x1x1xf32>
    %266 = vector.extract %265[0, 0, 0] : f32 from vector<1x1x1xf32>
    %cst_101 = arith.constant 0.166666672 : f32
    %267 = arith.mulf %266, %cst_101 : f32
    %268 = tpu.iota {dimensions = array<i32: 1>} : vector<1x128xi32>
    %cst_102 = arith.constant 1.000000e+00 : f32
    %269 = vector.broadcast %cst_102 : f32 to vector<1x128xf32>
    %cst_103 = arith.constant 0.000000e+00 : f32
    %270 = vector.broadcast %cst_103 : f32 to vector<1x128xf32>
    %c0_i32 = arith.constant 0 : i32
    %271 = vector.broadcast %c0_i32 : i32 to vector<1x128xi32>
    %272 = arith.cmpi eq, %268, %271 : vector<1x128xi32>
    %273 = vector.broadcast %59 : f32 to vector<1x128xf32>
    %274 = arith.select %272, %273, %269 : vector<1x128xi1>, vector<1x128xf32>
    %c0_i32_104 = arith.constant 0 : i32
    %275 = vector.broadcast %c0_i32_104 : i32 to vector<1x128xi32>
    %276 = arith.cmpi eq, %268, %275 : vector<1x128xi32>
    %cst_105 = arith.constant 4.480000e-02 : f32
    %277 = vector.broadcast %cst_105 : f32 to vector<1x128xf32>
    %278 = arith.select %276, %277, %270 : vector<1x128xi1>, vector<1x128xf32>
    %c1_i32 = arith.constant 1 : i32
    %279 = vector.broadcast %c1_i32 : i32 to vector<1x128xi32>
    %280 = arith.cmpi eq, %268, %279 : vector<1x128xi32>
    %281 = vector.broadcast %112 : f32 to vector<1x128xf32>
    %282 = arith.select %280, %281, %274 : vector<1x128xi1>, vector<1x128xf32>
    %c1_i32_106 = arith.constant 1 : i32
    %283 = vector.broadcast %c1_i32_106 : i32 to vector<1x128xi32>
    %284 = arith.cmpi eq, %268, %283 : vector<1x128xi32>
    %cst_107 = arith.constant 2.856000e-01 : f32
    %285 = vector.broadcast %cst_107 : f32 to vector<1x128xf32>
    %286 = arith.select %284, %285, %278 : vector<1x128xi1>, vector<1x128xf32>
    %c2_i32 = arith.constant 2 : i32
    %287 = vector.broadcast %c2_i32 : i32 to vector<1x128xi32>
    %288 = arith.cmpi eq, %268, %287 : vector<1x128xi32>
    %289 = vector.broadcast %165 : f32 to vector<1x128xf32>
    %290 = arith.select %288, %289, %282 : vector<1x128xi1>, vector<1x128xf32>
    %c2_i32_108 = arith.constant 2 : i32
    %291 = vector.broadcast %c2_i32_108 : i32 to vector<1x128xi32>
    %292 = arith.cmpi eq, %268, %291 : vector<1x128xi32>
    %cst_109 = arith.constant 3.001000e-01 : f32
    %293 = vector.broadcast %cst_109 : f32 to vector<1x128xf32>
    %294 = arith.select %292, %293, %286 : vector<1x128xi1>, vector<1x128xf32>
    %c3_i32 = arith.constant 3 : i32
    %295 = vector.broadcast %c3_i32 : i32 to vector<1x128xi32>
    %296 = arith.cmpi eq, %268, %295 : vector<1x128xi32>
    %297 = vector.broadcast %218 : f32 to vector<1x128xf32>
    %298 = arith.select %296, %297, %290 : vector<1x128xi1>, vector<1x128xf32>
    %c3_i32_110 = arith.constant 3 : i32
    %299 = vector.broadcast %c3_i32_110 : i32 to vector<1x128xi32>
    %300 = arith.cmpi eq, %268, %299 : vector<1x128xi32>
    %cst_111 = arith.constant 2.363000e-01 : f32
    %301 = vector.broadcast %cst_111 : f32 to vector<1x128xf32>
    %302 = arith.select %300, %301, %294 : vector<1x128xi1>, vector<1x128xf32>
    %c4_i32 = arith.constant 4 : i32
    %303 = vector.broadcast %c4_i32 : i32 to vector<1x128xi32>
    %304 = arith.cmpi eq, %268, %303 : vector<1x128xi32>
    %305 = vector.broadcast %267 : f32 to vector<1x128xf32>
    %306 = arith.select %304, %305, %298 : vector<1x128xi1>, vector<1x128xf32>
    %c4_i32_112 = arith.constant 4 : i32
    %307 = vector.broadcast %c4_i32_112 : i32 to vector<1x128xi32>
    %308 = arith.cmpi eq, %268, %307 : vector<1x128xi32>
    %cst_113 = arith.constant 1.333000e-01 : f32
    %309 = vector.broadcast %cst_113 : f32 to vector<1x128xf32>
    %310 = arith.select %308, %309, %302 : vector<1x128xi1>, vector<1x128xf32>
    %311 = math.log %306 : vector<1x128xf32>
    %312 = arith.mulf %310, %311 : vector<1x128xf32>
    %313 = vector.shape_cast %312 : vector<1x128xf32> to vector<1x1x128xf32>
    %cst_114 = arith.constant dense<0.000000e+00> : vector<1xf32>
    %314 = vector.multi_reduction <add>, %313, %cst_114 [1, 2] : vector<1x1x128xf32> to vector<1xf32>
    %315 = vector.shape_cast %314 : vector<1xf32> to vector<1x1x1xf32>
    %316 = vector.extract %315[0, 0, 0] : f32 from vector<1x1x1xf32>
    %317 = vector.broadcast %316 : f32 to vector<1x128xf32>
    %318 = math.exp %317 : vector<1x128xf32>
    %319 = vector.shape_cast %318 : vector<1x128xf32> to vector<1x1x128xf32>
    %cst_115 = arith.constant dense<0xFF800000> : vector<1xf32>
    %320 = vector.multi_reduction <maximumf>, %319, %cst_115 [1, 2] : vector<1x1x128xf32> to vector<1xf32>
    %321 = vector.shape_cast %320 : vector<1xf32> to vector<1x1x1xf32>
    %322 = vector.extract %321[0, 0, 0] : f32 from vector<1x1x1xf32>
    %c0_116 = arith.constant 0 : index
    %323 = memref.load %arg7[%c0_116] : memref<1xf32, #tpu.memory_space<smem>>
    memref.store %322, %arg7[%c0_116] : memref<1xf32, #tpu.memory_space<smem>>
    return
  }
}

</mosaic_0001>

<bundles_post_ra>
// kernel: ms_ssim.1
= control target key start
LH: loop header
LB: loop body
LE: loop exit
PB: predicated region body
PF: predicated region fallthrough
CT: control target
= control target key end

     0   :  { %12 = vsyncpa [#allocation4], 0  ;;  %s1833_s0 = inlined_call_operand.vmem [shape: f32[8,256], index: 0, kind: input, shape index: {}]   ;;  %s1834_s1 = inlined_call_operand.vmem [shape: f32[8,256], index: 1, kind: input, shape index: {}]   ;;  %s1835_s2 = inlined_call_operand.hbm [shape: f32[256,512], index: 2, kind: input, shape index: {}]   ;;  %s1836_s3 = inlined_call_operand.vmem [shape: bf16[256,256], index: 3, kind: input, shape index: {}]   ;;  %s1837_s4 = inlined_call_operand.vmem [shape: bf16[64,128], index: 4, kind: input, shape index: {}]   ;;  %s1838_s5 = inlined_call_operand.vmem [shape: bf16[16,128], index: 5, kind: input, shape index: {}]   ;;  %s1839_s6 = inlined_call_operand.vmem [shape: bf16[4,128], index: 6, kind: input, shape index: {}]   ;;  %s1840_s7 = inlined_call_operand.hbm [shape: f32[1], index: 7, kind: output, shape index: {}]  }
   0x1   :  { %13 = vsyncpa [#allocation5], 0  ;;  %s1516_s24 = smov [#allocation3]   ;;  %s1480_s28 = scalar_lea.hbm %s1835_s2, 16384 }
   0x2   :  { %s23_s25 = sshll.u32 %s1516_s24, 4  ;;  %p1481_p0 = scmp.ne.s32.totalorder %s1835_s2, %s1480_s28  ;;  %s24_s25 = int_to_ptr.vmem [resolvable:$true] %s23_s25 }
   0x3   :  { %p1484_p1 = scmp.lt.u32.totalorder %s1480_s28, %s1835_s2 }
   0x5   :  { %p1486_p2 = pnand %p1484_p1, %p1481_p0 }
   0x7   :  { %1489 = shalt.err (!%p1486_p2)
}
   0x8   :  { %s1490_s10 = scalar_lea.vmem %s24_s25, 16384  ;;  %p1495_p4 = scmp.lt.s32.totalorder %s24_s25, %s24_s25 }
   0x9   :  { %p1491_p3 = scmp.ne.s32.totalorder %s24_s25, %s1490_s10  ;;  %p1496_p5 = scmp.lt.s32.totalorder %s1490_s10, %s1490_s10 }
   0xb   :  { %p1497_p6 = por %p1496_p5, %p1495_p4 }
   0xd   :  { %p1498_p7 = pnand %p1497_p6, %p1491_p3 }
   0xf   :  { %1501 = shalt.err (!%p1498_p7)
}
  0x10   :  { %s1517_s11 = smov 512   ;;  %s1518_s12 = smov 32  }
  0x11   :  { %29 = dma.hbm_to_vmem [thread:$0]  %s1835_s2, 16384, %s24_s25, [#allocation4], %s1517_s11, %s1517_s11, %s1518_s12  }
  0x12   :  { %1512 = dma.done.wait [#allocation4], 16384  }
  0x13   :  { %1513 = vsyncadd [#allocation4], 4294950912  ;;  %v63_v0 = vld [vmem:[#allocation3 + $0x8] sm:$0xff]  ;;  %v62_v2 = vld [vmem:[#allocation3] sm:$0xff]  ;;  %vm1520_vm0 = vmmov 0   ;;  %vm673_vm1 = vcmask 523264  }
  0x14   :  { %v67_v1 = vld [vmem:[#allocation3 + $0x28] sm:$0xff]  ;;  %v66_v4 = vld [vmem:[#allocation3 + $0x20] sm:$0xff]  ;;  %v65_v21 = vld [vmem:[#allocation3 + $0x18] sm:$0xff]  ;;  %vm819_vm2 = vcmask 130048   ;;  %vm939_vm3 = vcmask 31744   ;;  %vm966_vm4 = vcmask 1041408  }
  0x15   :  { %v1261_v3 = vpack.c.bf16 %v67_v1, %v63_v0  ;;  %v71_v5 = vld [vmem:[#allocation3 + $0x48] sm:$0xff]  ;;  %v1263_v7 = vpack.c.bf16 %v66_v4, %v62_v2  ;;  %v70_v9 = vld [vmem:[#allocation3 + $0x40] sm:$0xff]  ;;  %v69_v25 = vld [vmem:[#allocation3 + $0x38] sm:$0xff]  ;;  %vm1082_vm8 = vcmask 7168   ;;  %s1502_s28 = scalar_lea.hbm %s1840_s7, 16 }
  0x16   :  { %v75_v6 = vld [vmem:[#allocation3 + $0x68] sm:$0xff]  ;;  %v74_v10 = vld [vmem:[#allocation3 + $0x60] sm:$0xff]  ;;  %v1325_v27 = vpack.c.bf16 %v69_v25, %v65_v21  ;;  %v64_v28 = vld [vmem:[#allocation3 + $0x10] sm:$0xff]  ;;  %p1503_p8 = scmp.ne.s32.totalorder %s1840_s7, %s1502_s28  ;;  %p1506_p9 = scmp.lt.u32.totalorder %s1502_s28, %s1840_s7 }
  0x17   :  { %v1265_v8 = vpack.c.bf16 %v75_v6, %v71_v5  ;;  %v79_v11 = vld [vmem:[#allocation3 + $0x88] sm:$0xff]  ;;  %1262 = vmatprep.subr.bf16.mxu0 %v1261_v3  ;;  %v1267_v13 = vpack.c.bf16 %v74_v10, %v70_v9  ;;  %v78_v15 = vld [vmem:[#allocation3 + $0x80] sm:$0xff]  ;;  %v68_v29 = vld [vmem:[#allocation3 + $0x30] sm:$0xff] }
  0x18   :  { %v83_v12 = vld [vmem:[#allocation3 + $0xa8] sm:$0xff]  ;;  %1264 = vmatpush1.bf16.msra.mxu0 %v1263_v7  ;;  %v82_v16 = vld [vmem:[#allocation3 + $0xa0] sm:$0xff]  ;;  %v1327_v30 = vpack.c.bf16 %v68_v29, %v64_v28  ;;  %v73_v31 = vld [vmem:[#allocation3 + $0x58] sm:$0xff]  ;;  %1326 = vmatprep.subr.bf16.mxu1 %v1325_v27  ;;  %p1508_p10 = pnand %p1506_p9, %p1503_p8 }
  0x19   :  { %1266 = vmatprep.subr.bf16.mxu0 %v1265_v8  ;;  %v1269_v14 = vpack.c.bf16 %v83_v12, %v79_v11  ;;  %v87_v17 = vld [vmem:[#allocation3 + $0xc8] sm:$0xff]  ;;  %v1271_v19 = vpack.c.bf16 %v82_v16, %v78_v15  ;;  %v86_v20 = vld [vmem:[#allocation3 + $0xc0] sm:$0xff]  ;;  %v77_v32 = vld [vmem:[#allocation3 + $0x78] sm:$0xff] }
  0x1a   :  { %v91_v18 = vld [vmem:[#allocation3 + $0xe8] sm:$0xff]  ;;  %v90_v23 = vld [vmem:[#allocation3 + $0xe0] sm:$0xff]  ;;  %v1329_v35 = vpack.c.bf16 %v77_v32, %v73_v31  ;;  %v72_v36 = vld [vmem:[#allocation3 + $0x50] sm:$0xff]  ;;  %1328 = vmatpush1.bf16.msra.mxu1 %v1327_v30 }
  0x1b   :  { %v1273_v22 = vpack.c.bf16 %v91_v18, %v87_v17  ;;  %v95_v24 = vld [vmem:[#allocation3 + $0x108] sm:$0xff]  ;;  %v1275_v33 = vpack.c.bf16 %v90_v23, %v86_v20  ;;  %v94_v34 = vld [vmem:[#allocation3 + $0x100] sm:$0xff]  ;;  %v76_v40 = vld [vmem:[#allocation3 + $0x70] sm:$0xff] }
  0x1c   :  { %1268 = vmatpush1.bf16.msra.mxu0 %v1267_v13  ;;  %v99_v26 = vld [vmem:[#allocation3 + $0x128] sm:$0xff]  ;;  %v98_v38 = vld [vmem:[#allocation3 + $0x120] sm:$0xff]  ;;  %1330 = vmatprep.subr.bf16.mxu1 %v1329_v35  ;;  %v1331_v42 = vpack.c.bf16 %v76_v40, %v72_v36  ;;  %v81_v43 = vld [vmem:[#allocation3 + $0x98] sm:$0xff] }
  0x1d   :  { %1270 = vmatprep.subr.bf16.mxu0 %v1269_v14  ;;  %v1277_v37 = vpack.c.bf16 %v99_v26, %v95_v24  ;;  %v103_v39 = vld [vmem:[#allocation3 + $0x148] sm:$0xff]  ;;  %v85_v44 = vld [vmem:[#allocation3 + $0xb8] sm:$0xff]  ;;  %v80_v46 = vld [vmem:[#allocation3 + $0x90] sm:$0xff]  ;;  %v1279_v48 = vpack.c.bf16 %v98_v38, %v94_v34 }
  0x1e   :  { %v107_v41 = vld [vmem:[#allocation3 + $0x168] sm:$0xff]  ;;  %v1333_v45 = vpack.c.bf16 %v85_v44, %v81_v43  ;;  %v84_v47 = vld [vmem:[#allocation3 + $0xb0] sm:$0xff]  ;;  %v102_v49 = vld [vmem:[#allocation3 + $0x140] sm:$0xff]  ;;  %1332 = vmatpush1.bf16.msra.mxu1 %v1331_v42 }
  0x1f   :  { %v89_v50 = vld [vmem:[#allocation3 + $0xd8] sm:$0xff]  ;;  %v1281_v51 = vpack.c.bf16 %v107_v41, %v103_v39  ;;  %v106_v52 = vld [vmem:[#allocation3 + $0x160] sm:$0xff]  ;;  %v111_v53 = vld [vmem:[#allocation3 + $0x188] sm:$0xff]  ;;  %v1335_v54 = vpack.c.bf16 %v84_v47, %v80_v46 }
  0x20   :  { %1272 = vmatpush1.bf16.msra.mxu0 %v1271_v19  ;;  %v93_v55 = vld [vmem:[#allocation3 + $0xf8] sm:$0xff]  ;;  %v115_v56 = vld [vmem:[#allocation3 + $0x1a8] sm:$0xff]  ;;  %1334 = vmatprep.subr.bf16.mxu1 %v1333_v45  ;;  %v88_v58 = vld [vmem:[#allocation3 + $0xd0] sm:$0xff]  ;;  %v1283_v62 = vpack.c.bf16 %v106_v52, %v102_v49 }
  0x21   :  { %1274 = vmatprep.subr.bf16.mxu0 %v1273_v22  ;;  %v1337_v57 = vpack.c.bf16 %v93_v55, %v89_v50  ;;  %v92_v59 = vld [vmem:[#allocation3 + $0xf0] sm:$0xff]  ;;  %v97_v60 = vld [vmem:[#allocation3 + $0x118] sm:$0xff]  ;;  %v1285_v63 = vpack.c.bf16 %v115_v56, %v111_v53  ;;  %v110_v0 = vld [vmem:[#allocation3 + $0x180] sm:$0xff] }
  0x22   :  { %v101_v61 = vld [vmem:[#allocation3 + $0x138] sm:$0xff]  ;;  %v114_v1 = vld [vmem:[#allocation3 + $0x1a0] sm:$0xff]  ;;  %v119_v2 = vld [vmem:[#allocation3 + $0x1c8] sm:$0xff]  ;;  %1336 = vmatpush1.bf16.msra.mxu1 %v1335_v54  ;;  %v1339_v3 = vpack.c.bf16 %v92_v59, %v88_v58 }
  0x23   :  { %v123_v4 = vld [vmem:[#allocation3 + $0x1e8] sm:$0xff]  ;;  %1338 = vmatprep.subr.bf16.mxu1 %v1337_v57  ;;  %v1341_v5 = vpack.c.bf16 %v101_v61, %v97_v60  ;;  %v96_v6 = vld [vmem:[#allocation3 + $0x110] sm:$0xff]  ;;  %v105_v8 = vld [vmem:[#allocation3 + $0x158] sm:$0xff]  ;;  %v1287_v10 = vpack.c.bf16 %v114_v1, %v110_v0 }
  0x24   :  { %1276 = vmatpush1.bf16.msra.mxu0 %v1275_v33  ;;  %v100_v7 = vld [vmem:[#allocation3 + $0x130] sm:$0xff]  ;;  %v109_v9 = vld [vmem:[#allocation3 + $0x178] sm:$0xff]  ;;  %v1289_v11 = vpack.c.bf16 %v123_v4, %v119_v2  ;;  %v118_v12 = vld [vmem:[#allocation3 + $0x1c0] sm:$0xff] }
  0x25   :  { %1278 = vmatprep.subr.bf16.mxu0 %v1277_v37  ;;  %v122_v13 = vld [vmem:[#allocation3 + $0x1e0] sm:$0xff]  ;;  %v127_v14 = vld [vmem:[#allocation3 + $0x208] sm:$0xff]  ;;  %v1343_v15 = vpack.c.bf16 %v100_v7, %v96_v6  ;;  %v1345_v17 = vpack.c.bf16 %v109_v9, %v105_v8  ;;  %v104_v18 = vld [vmem:[#allocation3 + $0x150] sm:$0xff] }
  0x26   :  { %1340 = vmatpush1.bf16.msra.mxu1 %v1339_v3  ;;  %v131_v16 = vld [vmem:[#allocation3 + $0x228] sm:$0xff]  ;;  %v108_v19 = vld [vmem:[#allocation3 + $0x170] sm:$0xff]  ;;  %v113_v20 = vld [vmem:[#allocation3 + $0x198] sm:$0xff]  ;;  %v1291_v22 = vpack.c.bf16 %v122_v13, %v118_v12 }
  0x27   :  { %1342 = vmatprep.subr.bf16.mxu1 %v1341_v5  ;;  %v117_v21 = vld [vmem:[#allocation3 + $0x1b8] sm:$0xff]  ;;  %v1293_v23 = vpack.c.bf16 %v131_v16, %v127_v14  ;;  %v126_v24 = vld [vmem:[#allocation3 + $0x200] sm:$0xff]  ;;  %v135_v26 = vld [vmem:[#allocation3 + $0x248] sm:$0xff]  ;;  %v1347_v27 = vpack.c.bf16 %v108_v19, %v104_v18 }
  0x28   :  { %1280 = vmatpush1.bf16.msra.mxu0 %v1279_v48  ;;  %v130_v25 = vld [vmem:[#allocation3 + $0x220] sm:$0xff]  ;;  %v139_v28 = vld [vmem:[#allocation3 + $0x268] sm:$0xff]  ;;  %v1349_v29 = vpack.c.bf16 %v117_v21, %v113_v20  ;;  %v112_v30 = vld [vmem:[#allocation3 + $0x190] sm:$0xff] }
  0x29   :  { %1282 = vmatprep.subr.bf16.mxu0 %v1281_v51  ;;  %v116_v31 = vld [vmem:[#allocation3 + $0x1b0] sm:$0xff]  ;;  %v121_v32 = vld [vmem:[#allocation3 + $0x1d8] sm:$0xff]  ;;  %v1295_v34 = vpack.c.bf16 %v130_v25, %v126_v24  ;;  %v134_v35 = vld [vmem:[#allocation3 + $0x240] sm:$0xff]  ;;  %v1297_v36 = vpack.c.bf16 %v139_v28, %v135_v26 }
  0x2a   :  { %1344 = vmatpush1.bf16.msra.mxu1 %v1343_v15  ;;  %v125_v33 = vld [vmem:[#allocation3 + $0x1f8] sm:$0xff]  ;;  %v138_v37 = vld [vmem:[#allocation3 + $0x260] sm:$0xff]  ;;  %v143_v38 = vld [vmem:[#allocation3 + $0x288] sm:$0xff]  ;;  %v1351_v40 = vpack.c.bf16 %v116_v31, %v112_v30 }
  0x2b   :  { %1346 = vmatprep.subr.bf16.mxu1 %v1345_v17  ;;  %v147_v39 = vld [vmem:[#allocation3 + $0x2a8] sm:$0xff]  ;;  %v1353_v41 = vpack.c.bf16 %v125_v33, %v121_v32  ;;  %v120_v42 = vld [vmem:[#allocation3 + $0x1d0] sm:$0xff]  ;;  %v43_v44 = vld [vmem:[%s1833_s0 + $0x8] sm:$0xff]  ;;  %v1299_v49 = vpack.c.bf16 %v138_v37, %v134_v35 }
  0x2c   :  { %1284 = vmatpush1.bf16.msra.mxu0 %v1283_v62  ;;  %v124_v43 = vld [vmem:[#allocation3 + $0x1f0] sm:$0xff]  ;;  %v129_v45 = vld [vmem:[#allocation3 + $0x218] sm:$0xff]  ;;  %v45_v47 = vadd.f32 1.0, %v43_v44  ;;  %v142_v50 = vld [vmem:[#allocation3 + $0x280] sm:$0xff]  ;;  %v1301_v53 = vpack.c.bf16 %v147_v39, %v143_v38 }
  0x2d   :  { %1286 = vmatprep.subr.bf16.mxu0 %v1285_v63  ;;  %v133_v46 = vld [vmem:[#allocation3 + $0x238] sm:$0xff]  ;;  %v49_v52 = vld [vmem:[%s1834_s1 + $0x8] sm:$0xff]  ;;  %v151_v55 = vld [vmem:[#allocation3 + $0x2c8] sm:$0xff]  ;;  %v1355_v56 = vpack.c.bf16 %v124_v43, %v120_v42 }
  0x2e   :  { %1348 = vmatpush1.bf16.msra.mxu1 %v1347_v27  ;;  %v42_v48 = vld [vmem:[%s1833_s0] sm:$0xff]  ;;  %v146_v54 = vld [vmem:[#allocation3 + $0x2a0] sm:$0xff]  ;;  %v1583_v57 = vmul.f32 0.5, %v45_v47  ;;  %v51_v58 = vadd.f32 1.0, %v49_v52  ;;  %v155_v60 = vld [vmem:[#allocation3 + $0x2e8] sm:$0xff]  ;;  %v1357_v61 = vpack.c.bf16 %v133_v46, %v129_v45 }
  0x2f   :  { %1350 = vmatprep.subr.bf16.mxu1 %v1349_v29  ;;  %v44_v51 = vadd.f32 1.0, %v42_v48  ;;  %v48_v59 = vld [vmem:[%s1834_s1] sm:$0xff]  ;;  %v128_v62 = vld [vmem:[#allocation3 + $0x210] sm:$0xff]  ;;  %v1303_v5 = vpack.c.bf16 %v146_v54, %v142_v50  ;;  %v1305_v7 = vpack.c.bf16 %v155_v60, %v151_v55  ;;  %v150_v8 = vld [vmem:[#allocation3 + $0x2c0] sm:$0xff] }
  0x30   :  { %1288 = vmatpush1.bf16.msra.mxu0 %v1287_v10  ;;  %v132_v63 = vld [vmem:[#allocation3 + $0x230] sm:$0xff]  ;;  %v50_v1 = vadd.f32 1.0, %v48_v59  ;;  %v137_v2 = vld [vmem:[#allocation3 + $0x258] sm:$0xff]  ;;  %254 = vmatprep.mubr.f32.mxu0 %v1583_v57  ;;  %v1591_v4 = vmul.f32 0.5, %v51_v58  ;;  %v154_v9 = vld [vmem:[#allocation3 + $0x2e0] sm:$0xff] }
  0x31   :  { %1290 = vmatprep.subr.bf16.mxu0 %v1289_v11  ;;  %v1588_v0 = vmul.f32 0.5, %v44_v51  ;;  %v141_v3 = vld [vmem:[#allocation3 + $0x278] sm:$0xff]  ;;  %331 = vmatprep.mubr.f32.mxu1 %v1583_v57  ;;  %v159_v10 = vld [vmem:[#allocation3 + $0x308] sm:$0xff]  ;;  %v1359_v11 = vpack.c.bf16 %v132_v63, %v128_v62  ;;  %v136_v14 = vld [vmem:[#allocation3 + $0x250] sm:$0xff]  ;;  %v1307_v20 = vpack.c.bf16 %v154_v9, %v150_v8 }
  0x32   :  { %1352 = vmatpush1.bf16.msra.mxu1 %v1351_v40  ;;  %v1594_v6 = vmul.f32 0.5, %v50_v1  ;;  %v163_v12 = vld [vmem:[#allocation3 + $0x328] sm:$0xff]  ;;  %v1361_v13 = vpack.c.bf16 %v141_v3, %v137_v2  ;;  %v140_v15 = vld [vmem:[#allocation3 + $0x270] sm:$0xff]  ;;  %v158_v16 = vld [vmem:[#allocation3 + $0x300] sm:$0xff] }
  0x33   :  { %1354 = vmatprep.subr.bf16.mxu1 %v1353_v41  ;;  %v162_v17 = vld [vmem:[#allocation3 + $0x320] sm:$0xff]  ;;  %v145_v18 = vld [vmem:[#allocation3 + $0x298] sm:$0xff]  ;;  %v167_v21 = vld [vmem:[#allocation3 + $0x348] sm:$0xff]  ;;  %v1363_v24 = vpack.c.bf16 %v140_v15, %v136_v14 }
  0x34   :  { %1292 = vmatpush1.bf16.msra.mxu0 %v1291_v22  ;;  %v149_v19 = vld [vmem:[#allocation3 + $0x2b8] sm:$0xff]  ;;  %v1309_v22 = vpack.c.bf16 %v163_v12, %v159_v10  ;;  %v144_v26 = vld [vmem:[#allocation3 + $0x290] sm:$0xff]  ;;  %v166_v28 = vld [vmem:[#allocation3 + $0x340] sm:$0xff]  ;;  %v1311_v32 = vpack.c.bf16 %v162_v17, %v158_v16 }
  0x35   :  { %1294 = vmatprep.subr.bf16.mxu0 %v1293_v23  ;;  %v171_v23 = vld [vmem:[#allocation3 + $0x368] sm:$0xff]  ;;  %v1365_v25 = vpack.c.bf16 %v149_v19, %v145_v18  ;;  %v148_v27 = vld [vmem:[#allocation3 + $0x2b0] sm:$0xff]  ;;  %v170_v29 = vld [vmem:[#allocation3 + $0x360] sm:$0xff] }
  0x36   :  { %1356 = vmatpush1.bf16.msra.mxu1 %v1355_v56  ;;  %v153_v30 = vld [vmem:[#allocation3 + $0x2d8] sm:$0xff]  ;;  %v175_v33 = vld [vmem:[#allocation3 + $0x388] sm:$0xff]  ;;  %v152_v38 = vld [vmem:[#allocation3 + $0x2d0] sm:$0xff]  ;;  %v1315_v44 = vpack.c.bf16 %v170_v29, %v166_v28 }
  0x37   :  { %1358 = vmatprep.subr.bf16.mxu1 %v1357_v61  ;;  %v157_v31 = vld [vmem:[#allocation3 + $0x2f8] sm:$0xff]  ;;  %v179_v35 = vld [vmem:[#allocation3 + $0x3a8] sm:$0xff]  ;;  %v156_v39 = vld [vmem:[#allocation3 + $0x2f0] sm:$0xff] }
  0x38   :  { %1296 = vmatpush1.bf16.msra.mxu0 %v1295_v34  ;;  %v1313_v34 = vpack.c.bf16 %v171_v23, %v167_v21  ;;  %v1369_v37 = vpack.c.bf16 %v157_v31, %v153_v30  ;;  %v174_v40 = vld [vmem:[#allocation3 + $0x380] sm:$0xff]  ;;  %v161_v42 = vld [vmem:[#allocation3 + $0x318] sm:$0xff]  ;;  %v183_v45 = vld [vmem:[#allocation3 + $0x3c8] sm:$0xff]  ;;  %v1317_v46 = vpack.c.bf16 %v179_v35, %v175_v33  ;;  %v1371_v48 = vpack.c.bf16 %v156_v39, %v152_v38 }
  0x39   :  { %1298 = vmatprep.subr.bf16.mxu0 %v1297_v36  ;;  %v1367_v36 = vpack.c.bf16 %v148_v27, %v144_v26  ;;  %v178_v41 = vld [vmem:[#allocation3 + $0x3a0] sm:$0xff]  ;;  %v165_v43 = vld [vmem:[#allocation3 + $0x338] sm:$0xff]  ;;  %v187_v47 = vld [vmem:[#allocation3 + $0x3e8] sm:$0xff]  ;;  %v1519_v23 = vmov 0.0  }
  0x3a   :  { %1360 = vmatpush1.bf16.msra.mxu1 %v1359_v11  ;;  %v160_v50 = vld [vmem:[#allocation3 + $0x310] sm:$0xff]  ;;  %v169_v52 = vld [vmem:[#allocation3 + $0x358] sm:$0xff]  ;;  %v1319_v54 = vpack.c.bf16 %v178_v41, %v174_v40  ;;  %v182_v55 = vld [vmem:[#allocation3 + $0x3c0] sm:$0xff]  ;;  %v1321_v56 = vpack.c.bf16 %v187_v47, %v183_v45 }
  0x3b   :  { %1362 = vmatprep.subr.bf16.mxu1 %v1361_v13  ;;  %v164_v51 = vld [vmem:[#allocation3 + $0x330] sm:$0xff]  ;;  %v186_v58 = vld [vmem:[#allocation3 + $0x3e0] sm:$0xff]  ;;  %v177_v63 = vld [vmem:[#allocation3 + $0x398] sm:$0xff] }
  0x3c   :  { %1300 = vmatpush1.bf16.msra.mxu0 %v1299_v49  ;;  %v1373_v49 = vpack.c.bf16 %v165_v43, %v161_v42  ;;  %v1375_v59 = vpack.c.bf16 %v164_v51, %v160_v50  ;;  %v168_v61 = vld [vmem:[#allocation3 + $0x350] sm:$0xff]  ;;  %v181_v1 = vld [vmem:[#allocation3 + $0x3b8] sm:$0xff]  ;;  %v1323_v2 = vpack.c.bf16 %v186_v58, %v182_v55  ;;  %v367_v51 = vpack.c.bf16 %v1591_v4, %v1583_v57 }
  0x3d   :  { %1302 = vmatprep.subr.bf16.mxu0 %v1301_v53  ;;  %v173_v53 = vld [vmem:[#allocation3 + $0x378] sm:$0xff]  ;;  %v172_v62 = vld [vmem:[#allocation3 + $0x370] sm:$0xff]  ;;  %v1381_v10 = vpack.c.bf16 %v181_v1, %v177_v63  ;;  %v345_v55 = vmul.f32 %v1583_v57, %v1583_v57  ;;  %v352_v63 = vmul.f32 %v1594_v6, %v1588_v0 }
  0x3e   :  { %1364 = vmatpush1.bf16.msra.mxu1 %v1363_v24  ;;  %v1377_v60 = vpack.c.bf16 %v173_v53, %v169_v52  ;;  %v176_v3 = vld [vmem:[#allocation3 + $0x390] sm:$0xff]  ;;  %v185_v8 = vld [vmem:[#allocation3 + $0x3d8] sm:$0xff]  ;;  %v1459_v52 = vld [vmem:[%s1837_s4 + $0x10] sm:$0xff]   ;;  %v366_v53 = vpack.c.bf16 %v1594_v6, %v1588_v0 }
  0x3f   :  { %1366 = vmatprep.subr.bf16.mxu1 %v1365_v25  ;;  %v1411_v9 = vld [vmem:[%s1836_s3 + $0x4] ss:$8 sps:$4 sm:$0xff]   ;;  %v1409_v12 = vld [vmem:[%s1836_s3] ss:$8 sps:$4 sm:$0xff]   ;;  %v1414_v13 = vld [vmem:[%s1836_s3 + $0x14] ss:$8 sps:$4 sm:$0xff]  }
  0x40   :  { %1304 = vmatpush1.bf16.msra.mxu0 %v1303_v5  ;;  %v180_v5 = vld [vmem:[#allocation3 + $0x3b0] sm:$0xff]  ;;  %v189_v11 = vld [vmem:[#allocation3 + $0x3f8] sm:$0xff] }
  0x41   :  { %1306 = vmatprep.subr.bf16.mxu0 %v1305_v7  ;;  %v1379_v7 = vpack.c.bf16 %v172_v62, %v168_v61  ;;  %v184_v14 = vld [vmem:[#allocation3 + $0x3d0] sm:$0xff]  ;;  %v1383_v16 = vpack.c.bf16 %v180_v5, %v176_v3  ;;  %v1385_v17 = vpack.c.bf16 %v189_v11, %v185_v8  ;;  %v1415_v21 = vld [vmem:[%s1836_s3 + $0x20] ss:$8 sps:$4 sm:$0xff]   ;;  %v1423_v26 = vld [vmem:[%s1836_s3 + $0x44] ss:$8 sps:$4 sm:$0xff]   ;;  %v353_v62 = vmul.f32 %v1591_v4, %v1583_v57 }
  0x42   :  { %1368 = vmatpush1.bf16.msra.mxu1 %v1367_v36  ;;  %v188_v15 = vld [vmem:[#allocation3 + $0x3f0] sm:$0xff]  ;;  %v1451_v24 = vld [vmem:[%s1837_s4] sm:$0xff]  }
  0x43   :  { %1370 = vmatprep.subr.bf16.mxu1 %v1369_v37  ;;  %v1412_v18 = vld [vmem:[%s1836_s3 + $0x10] ss:$8 sps:$4 sm:$0xff]   ;;  %v1387_v19 = vpack.c.bf16 %v188_v15, %v184_v14  ;;  %v1421_v27 = vld [vmem:[%s1836_s3 + $0x40] ss:$8 sps:$4 sm:$0xff]   ;;  %v1426_v28 = vld [vmem:[%s1836_s3 + $0x54] ss:$8 sps:$4 sm:$0xff]   ;;  %v371_v1 = vpack.c.bf16 %v353_v62, %v353_v62 }
  0x44   :  { %1308 = vmatpush1.bf16.msra.mxu0 %v1307_v20  ;;  %v1417_v20 = vld [vmem:[%s1836_s3 + $0x24] ss:$8 sps:$4 sm:$0xff]   ;;  %v1418_v25 = vld [vmem:[%s1836_s3 + $0x30] ss:$8 sps:$4 sm:$0xff]   ;;  %v1427_v31 = vld [vmem:[%s1836_s3 + $0x60] ss:$8 sps:$4 sm:$0xff]  }
  0x45   :  { %1310 = vmatprep.subr.bf16.mxu0 %v1309_v22  ;;  %v1420_v22 = vld [vmem:[%s1836_s3 + $0x34] ss:$8 sps:$4 sm:$0xff]   ;;  %v1424_v29 = vld [vmem:[%s1836_s3 + $0x50] ss:$8 sps:$4 sm:$0xff]   ;;  %v1429_v30 = vld [vmem:[%s1836_s3 + $0x64] ss:$8 sps:$4 sm:$0xff]  }
  0x46   :  { %1372 = vmatpush1.bf16.msra.mxu1 %v1371_v48  ;;  %v1430_v33 = vld [vmem:[%s1836_s3 + $0x70] ss:$8 sps:$4 sm:$0xff]   ;;  %v1433_v35 = vld [vmem:[%s1836_s3 + $0x80] ss:$8 sps:$4 sm:$0xff]   ;;  %v1438_v36 = vld [vmem:[%s1836_s3 + $0x94] ss:$8 sps:$4 sm:$0xff]  }
  0x47   :  { %1374 = vmatprep.subr.bf16.mxu1 %v1373_v49  ;;  %v1436_v37 = vld [vmem:[%s1836_s3 + $0x90] ss:$8 sps:$4 sm:$0xff]   ;;  %v1441_v38 = vld [vmem:[%s1836_s3 + $0xa4] ss:$8 sps:$4 sm:$0xff]   ;;  %v1439_v39 = vld [vmem:[%s1836_s3 + $0xa0] ss:$8 sps:$4 sm:$0xff]  }
  0x48   :  { %1312 = vmatpush1.bf16.msra.mxu0 %v1311_v32  ;;  %v1432_v32 = vld [vmem:[%s1836_s3 + $0x74] ss:$8 sps:$4 sm:$0xff]   ;;  %v1442_v41 = vld [vmem:[%s1836_s3 + $0xb0] ss:$8 sps:$4 sm:$0xff]   ;;  %v1447_v42 = vld [vmem:[%s1836_s3 + $0xc4] ss:$8 sps:$4 sm:$0xff]  }
  0x49   :  { %1314 = vmatprep.subr.bf16.mxu0 %v1313_v34  ;;  %v1435_v34 = vld [vmem:[%s1836_s3 + $0x84] ss:$8 sps:$4 sm:$0xff]   ;;  %v1444_v40 = vld [vmem:[%s1836_s3 + $0xb4] ss:$8 sps:$4 sm:$0xff]   ;;  %v1445_v43 = vld [vmem:[%s1836_s3 + $0xc0] ss:$8 sps:$4 sm:$0xff]  }
  0x4a   :  { %1376 = vmatpush1.bf16.msra.mxu1 %v1375_v59  ;;  %v1448_v45 = vld [vmem:[%s1836_s3 + $0xd0] ss:$8 sps:$4 sm:$0xff]   ;;  %v1452_v47 = vld [vmem:[%s1836_s3 + $0xe0] ss:$8 sps:$4 sm:$0xff]   ;;  %v1458_v49 = vld [vmem:[%s1836_s3 + $0xf4] ss:$8 sps:$4 sm:$0xff]   ;;  %v344_v59 = vmul.f32 %v1588_v0, %v1588_v0 }
  0x4b   :  { %1378 = vmatprep.subr.bf16.mxu1 %v1377_v60  ;;  %v1455_v48 = vld [vmem:[%s1837_s4 + $0x8] sm:$0xff]   ;;  %v1456_v50 = vld [vmem:[%s1836_s3 + $0xf0] ss:$8 sps:$4 sm:$0xff]   ;;  %v348_v60 = vmul.f32 %v1594_v6, %v1594_v6 }
  0x4c   :  { %1316 = vmatpush1.bf16.msra.mxu0 %v1315_v44  ;;  %v1450_v44 = vld [vmem:[%s1836_s3 + $0xd4] ss:$8 sps:$4 sm:$0xff]  }
  0x4d   :  { %1318 = vmatprep.subr.bf16.mxu0 %v1317_v46  ;;  %v1454_v46 = vld [vmem:[%s1836_s3 + $0xe4] ss:$8 sps:$4 sm:$0xff]   ;;  %v368_v61 = vpack.c.bf16 %v348_v60, %v344_v59 }
  0x4e   :  { %1380 = vmatpush1.bf16.msra.mxu1 %v1379_v7 }
  0x4f   :  { %1382 = vmatprep.subr.bf16.mxu1 %v1381_v10 }
  0x50   :  { %1320 = vmatpush1.bf16.msra.mxu0 %v1319_v54  ;;  %v1460_v54 = vld [vmem:[%s1837_s4 + $0x18] sm:$0xff]  }
  0x51   :  { %1322 = vmatprep.subr.bf16.mxu0 %v1321_v56  ;;  %v349_v56 = vmul.f32 %v1591_v4, %v1591_v4 }
  0x52   :  { %1384 = vmatpush1.bf16.msra.mxu1 %v1383_v16 }
  0x53   :  { %1386 = vmatprep.subr.bf16.mxu1 %v1385_v17  ;;  %v369_v58 = vpack.c.bf16 %v349_v56, %v345_v55  ;;  %v1461_v17 = vld [vmem:[%s1838_s5] sm:$0xff]  }
  0x54   :  { %1324 = vmatpush1.bf16.msra.mxu0 %v1323_v2  ;;  %v370_v2 = vpack.c.bf16 %v352_v63, %v352_v63 }
  0x55   :  { %564 = vmatprep.subr.bf16.mxu0 %v1411_v9 }
  0x56   :  { %1388 = vmatpush1.bf16.msra.mxu1 %v1387_v19 }
  0x57   :  { %255 = vmatmul.mubr.f32.vlgmr.msra.gmra.mrb[0].mxu0 %v1588_v0  ;;  %1213 = vmatprep.subr.bf16.mxu1 %v1519_v23 }
  0x58   :  { %260 = vmatprep.mubr.f32.mxu0 %v1591_v4  ;;  %565 = vmatpush1.bf16.msra.mxu0 %v1409_v12 }
  0x59   :  { %566 = vmatprep.subr.bf16.mxu0 %v1414_v13  ;;  %332 = vmatmul.mubr.f32.vlgmr.msra.gmra.mrb[0].mxu1 %v1588_v0 }
  0x5a   :  { %337 = vmatprep.mubr.f32.mxu1 %v1591_v4  ;;  %1214 = vmatpush3.bf16.msra.mxu1 %v1451_v24 }
  0x5b   :  { %261 = vmatmul.mubr.f32.gmra.mrb[2].mxu0 %v1594_v6  ;;  %1215 = vmatprep.subr.bf16.mxu1 %v1519_v23 }
  0x5c   :  { %567 = vmatpush1.bf16.msra.mxu0 %v1412_v18  ;;  %596 = vmatprep.mubr.bf16.mxu0 %v367_v51 }
  0x5d   :  { %568 = vmatprep.subr.bf16.mxu0 %v1417_v20  ;;  %338 = vmatmul.mubr.f32.gmra.mrb[2].mxu1 %v1594_v6 }
  0x5e   :  { %1216 = vmatpush3.bf16.msra.mxu1 %v1455_v48  ;;  %1221 = vmatprep.mubr.msk.bf16.mxu1 %vm1520_vm0, %v1519_v23 }
  0x5f   :  { %1217 = vmatprep.subr.bf16.mxu1 %v1519_v23 }
  0x60   :  { %569 = vmatpush1.bf16.msra.mxu0 %v1415_v21 }
  0x61   :  { %570 = vmatprep.subr.bf16.mxu0 %v1420_v22 }
  0x62   :  { %1218 = vmatpush3.bf16.msra.mxu1 %v1459_v52 }
  0x63   :  { %1219 = vmatprep.subr.bf16.mxu1 %v1519_v23 }
  0x64   :  { %571 = vmatpush1.bf16.msra.mxu0 %v1418_v25 }
  0x65   :  { %572 = vmatprep.subr.bf16.mxu0 %v1423_v26 }
  0x66   :  { %1220 = vmatpush3.bf16.msra.mxu1 %v1460_v54 }
  0x67   :  { %1233 = vmatprep.subr.bf16.mxu1 %v1519_v23 }
  0x68   :  { %573 = vmatpush1.bf16.msra.mxu0 %v1421_v27 }
  0x69   :  { %574 = vmatprep.subr.bf16.mxu0 %v1426_v28 }
  0x6c   :  { %575 = vmatpush1.bf16.msra.mxu0 %v1424_v29 }
  0x6d   :  { %576 = vmatprep.subr.bf16.mxu0 %v1429_v30 }
  0x70   :  { %577 = vmatpush1.bf16.msra.mxu0 %v1427_v31 }
  0x71   :  { %578 = vmatprep.subr.bf16.mxu0 %v1432_v32 }
  0x74   :  { %579 = vmatpush1.bf16.msra.mxu0 %v1430_v33 }
  0x75   :  { %580 = vmatprep.subr.bf16.mxu0 %v1435_v34 }
  0x78   :  { %581 = vmatpush1.bf16.msra.mxu0 %v1433_v35 }
  0x79   :  { %582 = vmatprep.subr.bf16.mxu0 %v1438_v36 }
  0x7c   :  { %583 = vmatpush1.bf16.msra.mxu0 %v1436_v37 }
  0x7d   :  { %584 = vmatprep.subr.bf16.mxu0 %v1441_v38 }
  0x80   :  { %585 = vmatpush1.bf16.msra.mxu0 %v1439_v39 }
  0x81   :  { %586 = vmatprep.subr.bf16.mxu0 %v1444_v40 }
  0x84   :  { %587 = vmatpush1.bf16.msra.mxu0 %v1442_v41 }
  0x85   :  { %588 = vmatprep.subr.bf16.mxu0 %v1447_v42 }
  0x88   :  { %589 = vmatpush1.bf16.msra.mxu0 %v1445_v43  ;;  %v956_v43 = vld [vmem:[%s1839_s6] sm:$0x3] }
  0x89   :  { %590 = vmatprep.subr.bf16.mxu0 %v1450_v44 }
  0x8c   :  { %591 = vmatpush1.bf16.msra.mxu0 %v1448_v45 }
  0x8d   :  { %592 = vmatprep.subr.bf16.mxu0 %v1454_v46 }
  0x90   :  { %593 = vmatpush1.bf16.msra.mxu0 %v1452_v47 }
  0x91   :  { %594 = vmatprep.subr.bf16.mxu0 %v1458_v49 }
  0x94   :  { %595 = vmatpush1.bf16.msra.mxu0 %v1456_v50 }
  0x97   :  { %597 = vmatmul.mubr.bf16.vlgmr.msra.gmra.mrb[4].mxu0 %v366_v53  ;;  %v968_v53 = vsel %vm966_vm4, %v956_v43, 0 }
  0x98   :  { %606 = vmatprep.mubr.bf16.mxu0 %v369_v58 }
  0x9f   :  { %607 = vmatmul.mubr.bf16.gmra.mrb[8].mxu0 %v368_v61 }
  0xa0   :  { %616 = vmatprep.mubr.bf16.mxu0 %v371_v1 }
  0xa7   :  { %617 = vmatmul.mubr.bf16.gmra.mrb[12].mxu0 %v370_v2 }
 0x12a   :  { %v256_v3 = vpop.f32.mrb[0].mxu0 }
 0x12b   :  { %674 = vst.msk [vmem:[#allocation2 + $0x10] sm:$0xff] %vm673_vm1, %v256_v3  ;;  %v676_v5 = vmul.f32 %v256_v3, %v256_v3  ;;  %v258_v7 = vpop.f32.mrb[1].mxu0 }
 0x12c   :  { %820 = vst.msk [vmem:[#allocation2 + $0x18] sm:$0xff] %vm819_vm2, %v258_v7  ;;  %v822_v8 = vmul.f32 %v258_v7, %v258_v7  ;;  %v333_v11 = vpop.f32.mrb[0].mxu1 }
 0x12d   :  { %677 = vst.msk [vmem:[#allocation2 + $0x60] sm:$0xff] %vm673_vm1, %v676_v5  ;;  %v942_v12 = vmul.f32 %v333_v11, %v333_v11  ;;  %v335_v13 = vpop.f32.mrb[1].mxu1 }
 0x12e   :  { %823 = vst.msk [vmem:[#allocation2 + $0x68] sm:$0xff] %vm819_vm2, %v822_v8  ;;  %v262_v57 = vpop.f32.mrb[2].mxu0  ;;  %v1056_v14 = vmul.f32 %v335_v13, %v335_v13 }
 0x12f   :  { %675 = vst.msk [vmem:[#allocation2 + $0x38] sm:$0xff] %vm673_vm1, %v262_v57  ;;  %v678_v0 = vmul.f32 %v262_v57, %v262_v57  ;;  %v680_v4 = vmul.f32 %v262_v57, %v256_v3  ;;  %v264_v6 = vpop.f32.mrb[3].mxu0 }
 0x130   :  { %821 = vst.msk [vmem:[#allocation2 + $0x40] sm:$0xff] %vm819_vm2, %v264_v6  ;;  %v824_v9 = vmul.f32 %v264_v6, %v264_v6  ;;  %v826_v10 = vmul.f32 %v264_v6, %v258_v7  ;;  %v339_v19 = vpop.f32.mrb[2].mxu1  ;;  %v1059_v24 = vsub.f32 %v1056_v14, %v1056_v14 }
 0x131   :  { %679 = vst.msk [vmem:[#allocation2 + $0x88] sm:$0xff] %vm673_vm1, %v678_v0  ;;  %681 = vst.msk [vmem:[#allocation2 + $0xb0] sm:$0xff] %vm673_vm1, %v680_v4  ;;  %v944_v20 = vmul.f32 %v339_v19, %v339_v19  ;;  %v946_v21 = vmul.f32 %v339_v19, %v333_v11  ;;  %v341_v22 = vpop.f32.mrb[3].mxu1 }
 0x132   :  { %825 = vst.msk [vmem:[#allocation2 + $0x90] sm:$0xff] %vm819_vm2, %v824_v9  ;;  %827 = vst.msk [vmem:[#allocation2 + $0xb8] sm:$0xff] %vm819_vm2, %v826_v10  ;;  %v682_v15 = vld [vmem:[#allocation2 + $0x10] sm:$0xff]  ;;  %v1057_v25 = vmul.f32 %v341_v22, %v341_v22  ;;  %v1058_v26 = vmul.f32 %v341_v22, %v335_v13 }
 0x133   :  { %940 = vst.msk [vmem:[#allocation2 + $0x20] sm:$0xff] %vm939_vm3, %v333_v11  ;;  %943 = vst.msk [vmem:[#allocation2 + $0x70] sm:$0xff] %vm939_vm3, %v942_v12  ;;  %v828_v51 = vld [vmem:[#allocation2 + $0x18] sm:$0xff] }
 0x134   :  { %941 = vst.msk [vmem:[#allocation2 + $0x48] sm:$0xff] %vm939_vm3, %v339_v19  ;;  %945 = vst.msk [vmem:[#allocation2 + $0x98] sm:$0xff] %vm939_vm3, %v944_v20  ;;  %v1060_v27 = vsub.f32 %v1057_v25, %v1057_v25  ;;  %v1073_v28 = vadd.f32 %v1057_v25, %v1056_v14  ;;  %v684_v32 = vld [vmem:[#allocation2 + $0x60] sm:$0xff]  ;;  %v1061_v36 = vsub.f32 %v1058_v26, %v1058_v26  ;;  %v1071_v38 = vmul.f32 2.0, %v1058_v26 }
 0x135   :  { %947 = vst.msk [vmem:[#allocation2 + $0xc0] sm:$0xff] %vm939_vm3, %v946_v21  ;;  %v830_v60 = vld [vmem:[#allocation2 + $0x68] sm:$0xff] }
 0x136   :  { %v683_v16 = vld [vmem:[#allocation2 + $0x38] sm:$0xff]  ;;  %v1064_v30 = vadd.f32 %v1060_v27, %v1059_v24  ;;  %v1074_v31 = vadd.f32 6.5025, %v1073_v28  ;;  %v1062_v40 = vmul.f32 2.0, %v1061_v36  ;;  %v1072_v45 = vadd.f32 6.5025, %v1071_v38 }
 0x137   :  { %v687_v18 = vpack.c.bf16 %v683_v16, %v682_v15  ;;  %v829_v47 = vld [vmem:[#allocation2 + $0x40] sm:$0xff] }
 0x138   :  { %v685_v29 = vld [vmem:[#allocation2 + $0x88] sm:$0xff]  ;;  %v1065_v34 = vadd.f32 58.5225, %v1064_v30  ;;  %1462 = vrcp.f32 %v1074_v31  ;;  %v686_v35 = vld [vmem:[#allocation2 + $0xb0] sm:$0xff]  ;;  %v1063_v48 = vadd.f32 58.5225, %v1062_v40  ;;  %v833_v52 = vpack.c.bf16 %v829_v47, %v828_v51 }
 0x139   :  { %1222 = vmatmul.mubr.msk.bf16.vlgmr.msra.gmra.mrb[4].mxu1 %vm673_vm1, %v687_v18  ;;  %v688_v33 = vpack.c.bf16 %v685_v29, %v684_v32  ;;  %v689_v37 = vpack.c.bf16 %v686_v35, %v686_v35  ;;  %v831_v58 = vld [vmem:[#allocation2 + $0x90] sm:$0xff]  ;;  %v832_v62 = vld [vmem:[#allocation2 + $0xb8] sm:$0xff]  ;;  %v655_v30 = vlaneseq }
 0x13a   :  { %1234 = vmatpush3.bf16.msra.mxu1 %v1461_v17  ;;  %1225 = vmatprep.mubr.msk.bf16.mxu1 %vm1520_vm0, %v1519_v23  ;;  %1464 = vrcp.f32 %v1065_v34  ;;  %v834_v61 = vpack.c.bf16 %v831_v58, %v830_v60  ;;  %v835_v63 = vpack.c.bf16 %v832_v62, %v832_v62  ;;  %v948_v1 = vld [vmem:[#allocation2 + $0x20] sm:$0xff]  ;;  %v950_v5 = vld [vmem:[#allocation2 + $0x70] sm:$0xff] }
 0x13b   :  { %1247 = vmatprep.subr.bf16.mxu1 %v1519_v23  ;;  %v949_v2 = vld [vmem:[#allocation2 + $0x48] sm:$0xff]  ;;  %v951_v7 = vld [vmem:[#allocation2 + $0x98] sm:$0xff]  ;;  %v1782_v36 = vshrl.u32 %v655_v30, 7 }
 0x13c   :  { %v953_v3 = vpack.c.bf16 %v949_v2, %v948_v1  ;;  %v954_v8 = vpack.c.bf16 %v951_v7, %v950_v5  ;;  %v952_v57 = vld [vmem:[#allocation2 + $0xc0] sm:$0xff] }
 0x13d   :  { %v955_v0 = vpack.c.bf16 %v952_v57, %v952_v57  ;;  %vm657_vm5 = vcmp.lt.s32.totalorder %v1782_v36, 6 }
 0x141   :  { %1226 = vmatmul.mubr.msk.bf16.gmra.mrb[8].mxu1 %vm673_vm1, %v688_v33 }
 0x142   :  { %1229 = vmatprep.mubr.msk.bf16.mxu1 %vm1520_vm0, %v1519_v23  ;;  %v1463_v39 = vpop.eup %1462 }
 0x143   :  { %v1076_v41 = vmul.f32 %v1463_v39, %v1074_v31 }
 0x144   :  { %v1465_v42 = vpop.eup %1464 }
 0x145   :  { %v1067_v44 = vmul.f32 %v1465_v42, %v1065_v34  ;;  %v1077_v46 = vsub.f32 2.0, %v1076_v41 }
 0x147   :  { %v1068_v49 = vsub.f32 2.0, %v1067_v44  ;;  %v1078_v50 = vmul.f32 %v1463_v39, %v1077_v46 }
 0x149   :  { %1230 = vmatmul.mubr.msk.bf16.gmra.mrb[12].mxu1 %vm673_vm1, %v689_v37  ;;  %v1079_v54 = vmul.f32 %v1078_v50, %v1072_v45  ;;  %v1069_v55 = vmul.f32 %v1465_v42, %v1068_v49 }
 0x14a   :  { %1235 = vmatprep.mubr.msk.bf16.mxu1 %vm1520_vm0, %v1519_v23 }
 0x14b   :  { %v1070_v56 = vmul.f32 %v1069_v55, %v1063_v48 }
 0x14d   :  { %v1767_v59 = vmul.f32 %v1079_v54, %v1070_v56 }
 0x151   :  { %1236 = vmatmul.mubr.msk.bf16.vlgmr.msra.gmra.mrb[16].mxu1 %vm819_vm2, %v833_v52  ;;  %v1180_v52 = vsel %vm657_vm5, 1.0, %v1519_v23 }
 0x152   :  { %1248 = vmatpush3.bf16.msra.mxu1 %v968_v53  ;;  %1239 = vmatprep.mubr.msk.bf16.mxu1 %vm1520_vm0, %v1519_v23 }
 0x159   :  { %1240 = vmatmul.mubr.msk.bf16.gmra.mrb[20].mxu1 %vm819_vm2, %v834_v61 }
 0x15a   :  { %1243 = vmatprep.mubr.msk.bf16.mxu1 %vm1520_vm0, %v1519_v23 }
 0x161   :  { %1244 = vmatmul.mubr.msk.bf16.gmra.mrb[24].mxu1 %vm819_vm2, %v835_v63  ;;  %vm1117_vm2 = vcmask 1040384  }
 0x162   :  { %1249 = vmatprep.mubr.msk.bf16.mxu1 %vm1520_vm0, %v1519_v23 }
 0x169   :  { %1250 = vmatmul.mubr.msk.bf16.vlgmr.msra.gmra.mrb[28].mxu1 %vm939_vm3, %v953_v3 }
 0x16a   :  { %1253 = vmatprep.mubr.msk.bf16.mxu1 %vm1520_vm0, %v1519_v23  ;;  %v598_v4 = vpop.f32.mrb[4].mxu0 }
 0x16b   :  { %v600_v6 = vpop.f32.mrb[5].mxu0  ;;  %v625_v13 = vmul.f32 %v598_v4, %v598_v4 }
 0x16c   :  { %v602_v9 = vpop.f32.mrb[6].mxu0  ;;  %v626_v14 = vmul.f32 %v600_v6, %v600_v6 }
 0x16d   :  { %v629_v10 = vmul.f32 %v602_v9, %v598_v4  ;;  %v604_v11 = vpop.f32.mrb[7].mxu0  ;;  %v627_v15 = vmul.f32 %v602_v9, %v602_v9 }
 0x16e   :  { %v630_v12 = vmul.f32 %v604_v11, %v600_v6  ;;  %v628_v16 = vmul.f32 %v604_v11, %v604_v11 }
 0x171   :  { %1254 = vmatmul.mubr.msk.bf16.gmra.mrb[32].mxu1 %vm939_vm3, %v954_v8 }
 0x172   :  { %1257 = vmatprep.mubr.msk.bf16.mxu1 %vm1520_vm0, %v1519_v23  ;;  %v608_v17 = vpop.f32.mrb[8].mxu0 }
 0x173   :  { %v631_v18 = vsub.f32 %v608_v17, %v625_v13  ;;  %v610_v19 = vpop.f32.mrb[9].mxu0  ;;  %v1788_v13 = vand.u32 127, %v655_v30 }
 0x174   :  { %v632_v20 = vsub.f32 %v610_v19, %v626_v14  ;;  %v612_v21 = vpop.f32.mrb[10].mxu0 }
 0x175   :  { %v633_v22 = vsub.f32 %v612_v21, %v627_v15  ;;  %v614_v24 = vpop.f32.mrb[11].mxu0  ;;  %vm804_vm6 = vcmp.lt.s32.totalorder %v1788_v13, 81  ;;  %vm924_vm9 = vcmp.lt.s32.totalorder %v1788_v13, 25  ;;  %vm1041_vm11 = vcmp.lt.s32.totalorder %v1788_v13, 9 }
 0x176   :  { %v634_v25 = vsub.f32 %v614_v24, %v628_v16  ;;  %vm805_vm7 = vmand %vm657_vm5, %vm804_vm6  ;;  %vm1094_vm13 = vcmp.eq.s32.totalorder %v1788_v13, 0  ;;  %vm1098_vm14 = vcmp.eq.s32.totalorder %v1788_v13, 1  ;;  %vm1102_vm15 = vcmp.eq.s32.totalorder %v1788_v13, 2 }
 0x177   :  { %v641_v26 = vadd.f32 %v633_v22, %v631_v18  ;;  %vm925_vm10 = vmand %vm657_vm5, %vm924_vm9  ;;  %vm1106_vm0 = vcmp.eq.s32.totalorder %v1788_v13, 3  ;;  %vm1110_vm1 = vcmp.eq.s32.totalorder %v1788_v13, 4 }
 0x178   :  { %v642_v27 = vadd.f32 %v634_v25, %v632_v20  ;;  %vm1042_vm12 = vmand %vm657_vm5, %vm1041_vm11 }
 0x179   :  { %1258 = vmatmul.mubr.msk.bf16.gmra.mrb[36].mxu1 %vm939_vm3, %v955_v0  ;;  %v643_v28 = vadd.f32 58.5225, %v641_v26 }
 0x17a   :  { %v644_v29 = vadd.f32 58.5225, %v642_v27  ;;  %v618_v32 = vpop.f32.mrb[12].mxu0 }
 0x17b   :  { %1466 = vrcp.f32 %v643_v28  ;;  %v620_v35 = vpop.f32.mrb[13].mxu0  ;;  %v635_v38 = vsub.f32 %v618_v32, %v629_v10 }
 0x17c   :  { %1468 = vrcp.f32 %v644_v29  ;;  %v636_v39 = vsub.f32 %v620_v35, %v630_v12  ;;  %v622_v40 = vpop.f32.mrb[14].mxu0 }
 0x17d   :  { %v623_v42 = vpop.f32.mrb[15].mxu0  ;;  %v637_v44 = vmul.f32 2.0, %v635_v38 }
 0x17e   :  { %v638_v45 = vmul.f32 2.0, %v636_v39  ;;  %v1081_v39 = vmul.f32 %v1180_v52, %v1767_v59 }
 0x17f   :  { %v639_v46 = vadd.f32 58.5225, %v637_v44 }
 0x180   :  { %v640_v48 = vadd.f32 58.5225, %v638_v45  ;;  %v1083_v44 = vsel %vm1082_vm8, %v1081_v39, 0.0 }
 0x185   :  { %v1467_v31 = vpop.eup %1466 }
 0x186   :  { %v1469_v33 = vpop.eup %1468  ;;  %v647_v34 = vmul.f32 %v1467_v31, %v643_v28 }
 0x187   :  { %v648_v37 = vmul.f32 %v1469_v33, %v644_v29 }
 0x188   :  { %v649_v41 = vsub.f32 2.0, %v647_v34 }
 0x189   :  { %v650_v43 = vsub.f32 2.0, %v648_v37 }
 0x18a   :  { %v651_v47 = vmul.f32 %v1467_v31, %v649_v41  ;;  %v1188_v31 = vsel %vm805_vm7, 1.0, %v1519_v23 }
 0x18b   :  { %v652_v49 = vmul.f32 %v1469_v33, %v650_v43 }
 0x18c   :  { %v653_v50 = vmul.f32 %v651_v47, %v639_v46 }
 0x18d   :  { %v654_v51 = vmul.f32 %v652_v49, %v640_v48 }
 0x18e   :  { %v660_v53 = vmul.f32 %v1180_v52, %v653_v50 }
 0x18f   :  { %v661_v54 = vmul.f32 %v1180_v52, %v654_v51 }
 0x191   :  { %v662_v55 = vadd.f32 %v661_v54, %v660_v53 }
 0x193   :  { %663 = vadd.xlane.f32.xlu0 %v662_v55 }
 0x20c   :  { %v765_v56 = vpop.f32.mrb[4].mxu1 }
 0x20d   :  { %v1223_v58 = vpop.f32.mrb[5].mxu1  ;;  %v787_v63 = vmul.f32 %v765_v56, %v765_v56 }
 0x20e   :  { %v768_v60 = vpop.f32.mrb[6].mxu1 }
 0x20f   :  { %v789_v61 = vmul.f32 %v768_v60, %v765_v56  ;;  %v1224_v62 = vpop.f32.mrb[7].mxu1  ;;  %v788_v2 = vmul.f32 %v768_v60, %v768_v60 }
 0x214   :  { %v773_v1 = vpop.f32.mrb[8].mxu1 }
 0x215   :  { %v790_v3 = vsub.f32 %v773_v1, %v787_v63  ;;  %v1227_v5 = vpop.f32.mrb[9].mxu1 }
 0x216   :  { %v776_v7 = vpop.f32.mrb[10].mxu1 }
 0x217   :  { %v791_v8 = vsub.f32 %v776_v7, %v788_v2  ;;  %v1228_v57 = vpop.f32.mrb[11].mxu1  ;;  %v1193_v7 = vsel %vm925_vm10, 1.0, %v1519_v23 }
 0x219   :  { %v795_v0 = vadd.f32 %v791_v8, %v790_v3 }
 0x21b   :  { %v796_v4 = vadd.f32 58.5225, %v795_v0 }
 0x21c   :  { %v781_v6 = vpop.f32.mrb[12].mxu1 }
 0x21d   :  { %1470 = vrcp.f32 %v796_v4  ;;  %v792_v9 = vsub.f32 %v781_v6, %v789_v61  ;;  %v1231_v10 = vpop.f32.mrb[13].mxu1 }
 0x21e   :  { %v784_v11 = vpop.f32.mrb[14].mxu1 }
 0x21f   :  { %v1232_v12 = vpop.f32.mrb[15].mxu1  ;;  %v793_v21 = vmul.f32 2.0, %v792_v9 }
 0x220   :  { %v664_v47 = vpop.xlane.xlu0 %663 }
 0x221   :  { %v794_v25 = vadd.f32 58.5225, %v793_v21  ;;  %v665_v49 = vrot.slane %v664_v47, 4 }
 0x223   :  { %v666_v53 = vadd.f32 %v665_v49, %v664_v47 }
 0x224   :  { %v887_v14 = vpop.f32.mrb[16].mxu1 }
 0x225   :  { %v1237_v15 = vpop.f32.mrb[17].mxu1  ;;  %v909_v24 = vmul.f32 %v887_v14, %v887_v14  ;;  %v667_v58 = vrot.slane %v666_v53, 2 }
 0x226   :  { %v890_v16 = vpop.f32.mrb[18].mxu1 }
 0x227   :  { %v1471_v17 = vpop.eup %1470  ;;  %v911_v18 = vmul.f32 %v890_v16, %v887_v14  ;;  %v1238_v19 = vpop.f32.mrb[19].mxu1  ;;  %v910_v28 = vmul.f32 %v890_v16, %v890_v16  ;;  %v668_v8 = vadd.f32 %v667_v58, %v666_v53 }
 0x228   :  { %v798_v20 = vmul.f32 %v1471_v17, %v796_v4 }
 0x229   :  { %v669_v9 = vrot.slane %v668_v8, 1 }
 0x22a   :  { %v799_v22 = vsub.f32 2.0, %v798_v20 }
 0x22b   :  { %v670_v12 = vadd.f32 %v669_v9, %v668_v8 }
 0x22c   :  { %v895_v26 = vpop.f32.mrb[20].mxu1  ;;  %v800_v27 = vmul.f32 %v1471_v17, %v799_v22 }
 0x22d   :  { %v912_v29 = vsub.f32 %v895_v26, %v909_v24  ;;  %v1241_v30 = vpop.f32.mrb[21].mxu1  ;;  %1389 = vpush %v670_v12 }
 0x22e   :  { %v898_v32 = vpop.f32.mrb[22].mxu1  ;;  %v801_v33 = vmul.f32 %v800_v27, %v794_v25  ;;  %v1197_v27 = vsel %vm1042_vm12, 1.0, %v1519_v23 }
 0x22f   :  { %v913_v34 = vsub.f32 %v898_v32, %v910_v28  ;;  %v1242_v35 = vpop.f32.mrb[23].mxu1 }
 0x230   :  { %v808_v37 = vmul.f32 %v1188_v31, %v801_v33 }
 0x231   :  { %v917_v38 = vadd.f32 %v913_v34, %v912_v29 }
 0x232   :  { %809 = vadd.xlane.f32.xlu0 %v808_v37 }
 0x233   :  { %v918_v40 = vadd.f32 58.5225, %v917_v38 }
 0x234   :  { %v903_v41 = vpop.f32.mrb[24].mxu1 }
 0x235   :  { %1472 = vrcp.f32 %v918_v40  ;;  %v914_v42 = vsub.f32 %v903_v41, %v911_v18  ;;  %v1245_v43 = vpop.f32.mrb[25].mxu1 }
 0x236   :  { %v906_v45 = vpop.f32.mrb[26].mxu1  ;;  %1084 = vadd.xlane.f32.xlu0 %v1083_v44 }
 0x237   :  { %v1246_v46 = vpop.f32.mrb[27].mxu1  ;;  %v915_v56 = vmul.f32 2.0, %v914_v42 }
 0x239   :  { %v916_v62 = vadd.f32 58.5225, %v915_v56 }
 0x23c   :  { %v1004_v48 = vpop.f32.mrb[28].mxu1 }
 0x23d   :  { %v1251_v50 = vpop.f32.mrb[29].mxu1  ;;  %v1026_v61 = vmul.f32 %v1004_v48, %v1004_v48 }
 0x23e   :  { %v1007_v51 = vpop.f32.mrb[30].mxu1 }
 0x23f   :  { %v1473_v54 = vpop.eup %1472  ;;  %v1028_v55 = vmul.f32 %v1007_v51, %v1004_v48  ;;  %v1252_v59 = vpop.f32.mrb[31].mxu1  ;;  %v1027_v2 = vmul.f32 %v1007_v51, %v1007_v51 }
 0x240   :  { %v920_v52 = vmul.f32 %v1473_v54, %v918_v40 }
 0x242   :  { %v921_v60 = vsub.f32 2.0, %v920_v52 }
 0x244   :  { %v1012_v63 = vpop.f32.mrb[32].mxu1  ;;  %v922_v1 = vmul.f32 %v1473_v54, %v921_v60 }
 0x245   :  { %v1029_v3 = vsub.f32 %v1012_v63, %v1026_v61  ;;  %v1255_v5 = vpop.f32.mrb[33].mxu1 }
 0x246   :  { %v1015_v57 = vpop.f32.mrb[34].mxu1  ;;  %v923_v0 = vmul.f32 %v922_v1, %v916_v62 }
 0x247   :  { %v1030_v4 = vsub.f32 %v1015_v57, %v1027_v2  ;;  %v1256_v6 = vpop.f32.mrb[35].mxu1 }
 0x248   :  { %v928_v10 = vmul.f32 %v1193_v7, %v923_v0 }
 0x249   :  { %v1034_v11 = vadd.f32 %v1030_v4, %v1029_v3  ;;  %v1097_v3 = vsel %vm1094_vm13, 0.0448, %v1519_v23 }
 0x24a   :  { %929 = vadd.xlane.f32.xlu1 %v928_v10  ;;  %v1101_v57 = vsel %vm1098_vm14, 0.2856, %v1097_v3 }
 0x24b   :  { %v1035_v14 = vadd.f32 58.5225, %v1034_v11  ;;  %v1105_v0 = vsel %vm1102_vm15, 0.3001, %v1101_v57 }
 0x24c   :  { %v1020_v15 = vpop.f32.mrb[36].mxu1  ;;  %v1109_v4 = vsel %vm1106_vm0, 0.2363, %v1105_v0 }
 0x24d   :  { %1474 = vrcp.f32 %v1035_v14  ;;  %v1031_v16 = vsub.f32 %v1020_v15, %v1028_v55  ;;  %v1259_v17 = vpop.f32.mrb[37].mxu1  ;;  %v1113_v9 = vsel %vm1110_vm1, 0.1333, %v1109_v4 }
 0x24e   :  { %v1023_v18 = vpop.f32.mrb[38].mxu1 }
 0x24f   :  { %v1260_v19 = vpop.f32.mrb[39].mxu1  ;;  %v1032_v22 = vmul.f32 2.0, %v1031_v16 }
 0x251   :  { %v1033_v25 = vadd.f32 58.5225, %v1032_v22 }
 0x257   :  { %v1475_v20 = vpop.eup %1474 }
 0x258   :  { %v1037_v21 = vmul.f32 %v1475_v20, %v1035_v14 }
 0x25a   :  { %v1038_v24 = vsub.f32 2.0, %v1037_v21 }
 0x25c   :  { %v1039_v26 = vmul.f32 %v1475_v20, %v1038_v24 }
 0x25e   :  { %v1040_v28 = vmul.f32 %v1039_v26, %v1033_v25  ;;  %s1390_s6 = spop %1389 }
 0x25f   :  { %s672_s17 = smul.f32 0.0006510417, %s1390_s6 }
 0x260   :  { %v1045_v29 = vmul.f32 %v1197_v27, %v1040_v28 }
 0x261   :  { %v1095_v58 = vstv %s672_s17 }
 0x262   :  { %1046 = vadd.xlane.f32.xlu1 %v1045_v29  ;;  %v1096_v60 = vsel %vm1094_vm13, %v1095_v58, 1.0 }
 0x2bf   :  { %v810_v30 = vpop.xlane.xlu0 %809 }
 0x2c0   :  { %v811_v31 = vrot.slane %v810_v30, 4 }
 0x2c2   :  { %v812_v32 = vadd.f32 %v811_v31, %v810_v30 }
 0x2c3   :  { %v1085_v44 = vpop.xlane.xlu0 %1084 }
 0x2c4   :  { %v813_v33 = vrot.slane %v812_v32, 2  ;;  %v1086_v45 = vrot.slane %v1085_v44, 4 }
 0x2c6   :  { %v814_v34 = vadd.f32 %v813_v33, %v812_v32  ;;  %v1087_v46 = vadd.f32 %v1086_v45, %v1085_v44 }
 0x2c8   :  { %v815_v35 = vrot.slane %v814_v34, 1  ;;  %v1088_v47 = vrot.slane %v1087_v46, 2 }
 0x2ca   :  { %v816_v37 = vadd.f32 %v815_v35, %v814_v34  ;;  %v1089_v51 = vadd.f32 %v1088_v47, %v1087_v46 }
 0x2cc   :  { %1391 = vpush %v816_v37  ;;  %v1090_v55 = vrot.slane %v1089_v51, 1 }
 0x2ce   :  { %v1091_v56 = vadd.f32 %v1090_v55, %v1089_v51 }
 0x2d7   :  { %v930_v38 = vpop.xlane.xlu1 %929 }
 0x2d8   :  { %v931_v39 = vrot.slane %v930_v38, 4 }
 0x2da   :  { %v932_v40 = vadd.f32 %v931_v39, %v930_v38 }
 0x2dc   :  { %v933_v36 = vrot.slane %v932_v40, 2 }
 0x2de   :  { %v934_v41 = vadd.f32 %v933_v36, %v932_v40 }
 0x2e0   :  { %v935_v42 = vrot.slane %v934_v41, 1 }
 0x2e2   :  { %v936_v43 = vadd.f32 %v935_v42, %v934_v41 }
 0x2e4   :  { %1393 = vpush %v936_v43 }
 0x2ef   :  { %v1047_v48 = vpop.xlane.xlu1 %1046 }
 0x2f0   :  { %v1048_v49 = vrot.slane %v1047_v48, 4 }
 0x2f2   :  { %v1049_v50 = vadd.f32 %v1048_v49, %v1047_v48 }
 0x2f4   :  { %v1050_v53 = vrot.slane %v1049_v50, 2 }
 0x2f6   :  { %v1051_v54 = vadd.f32 %v1050_v53, %v1049_v50 }
 0x2f8   :  { %v1052_v59 = vrot.slane %v1051_v54, 1 }
 0x2fa   :  { %v1053_v52 = vadd.f32 %v1052_v59, %v1051_v54 }
 0x2fc   :  { %1395 = vpush %v1053_v52 }
 0x2fd   :  { %1397 = vpush %v1091_v56  ;;  %s1392_s18 = spop %1391 }
 0x2fe   :  { %s818_s20 = smul.f32 0.002057613, %s1392_s18 }
 0x300   :  { %v1099_v61 = vstv %s818_s20 }
 0x301   :  { %v1100_v63 = vsel %vm1098_vm14, %v1099_v61, %v1096_v60 }
 0x315   :  { %s1394_s19 = spop %1393 }
 0x316   :  { %s938_s21 = smul.f32 0.006666667, %s1394_s19 }
 0x318   :  { %v1103_v62 = vstv %s938_s21 }
 0x319   :  { %v1104_v1 = vsel %vm1102_vm15, %v1103_v62, %v1100_v63 }
 0x32d   :  { %s1396_s0 = spop %1395 }
 0x32e   :  { %s1055_s1 = smul.f32 0.018518519, %s1396_s0  ;;  %s1398_s22 = spop %1397 }
 0x32f   :  { %s1093_s23 = smul.f32 0.16666667, %s1398_s22 }
 0x330   :  { %v1107_v2 = vstv %s1055_s1 }
 0x331   :  { %v1108_v5 = vsel %vm1106_vm0, %v1107_v2, %v1104_v1  ;;  %v1111_v7 = vstv %s1093_s23 }
 0x332   :  { %v1112_v8 = vsel %vm1110_vm1, %v1111_v7, %v1108_v5 }
 0x333   :  { %1476 = vlog2.f32 %v1112_v8 }
 0x33d   :  { %v1477_v6 = vpop.eup %1476 }
 0x33e   :  { %v1115_v10 = vmul.f32 0.6931472, %v1477_v6 }
 0x340   :  { %v1116_v11 = vmul.f32 %v1115_v10, %v1113_v9 }
 0x342   :  { %v1118_v12 = vsel %vm1117_vm2, %v1116_v11, 0.0 }
 0x343   :  { %1119 = vadd.xlane.f32.xlu1 %v1118_v12 }
 0x3d0   :  { %v1120_v14 = vpop.xlane.xlu1 %1119 }
 0x3d1   :  { %v1121_v23 = vrot.slane %v1120_v14, 4 }
 0x3d3   :  { %v1122_v15 = vadd.f32 %v1121_v23, %v1120_v14 }
 0x3d5   :  { %v1123_v16 = vrot.slane %v1122_v15, 2 }
 0x3d7   :  { %v1124_v17 = vadd.f32 %v1123_v16, %v1122_v15 }
 0x3d9   :  { %v1125_v18 = vrot.slane %v1124_v17, 1 }
 0x3db   :  { %v1126_v19 = vadd.f32 %v1125_v18, %v1124_v17 }
 0x3dd   :  { %1399 = vpush %v1126_v19 }
 0x40e   :  { %s1400_s24 = spop %1399 }
 0x40f   :  { %v1128_v20 = vstv %s1400_s24 }
 0x410   :  { %v1129_v13 = vmul.f32 1.442695, %v1128_v20 }
 0x412   :  { %1478 = vpow2.f32 %v1129_v13 }
 0x41c   :  { %v1479_v21 = vpop.eup %1478 }
 0x41d   :  { %1401 = vpush %v1479_v21 }
 0x44e   :  { %s1402_s25 = spop %1401 }
 0x44f   :  { %1133 = sst [smem:[#allocation6]] %s1402_s25 }
 0x450   :  { %1511 = shalt.err (!%p1508_p10)
}
 0x451   :  { %s1521_s10 = smov [#allocation6]  }
 0x452   :  { %1141 = dma.smem_to_hbm %s1521_s10, 16, %s1840_s7, [#allocation5]  }
 0x453   :  { %1514 = dma.done.wait [#allocation5], 16  }
 0x454   :  { %1515 = vsyncadd [#allocation5], 4294967280 }
 0x455   :  { %1145 = sfence }
 0x456   :  { %1146 = vsyncpa [#allocation4], 1 }
 0x457   :  { %1147 = vsyncpa [#allocation5], 1 }

</bundles_post_ra>
